<compile_context>
chip_gen: v5e
topology: v5e:2x2
jax: 0.10.0
libtpu: 0.0.40
codegen_flags: <defaults>
</compile_context>

<pallas_src>
import jax
import jax.numpy as jnp
from jax.experimental import pallas as pl
from jax.experimental.pallas import tpu as pltpu

FEAT_DIM = 256
OUT_DIM = 100
BN_EPS = 1e-5


def _round_up(x, m):
    return ((x + m - 1) // m) * m


HEAD_PAD = _round_up(OUT_DIM, 128)      # lane-dense head width (128)

# Whole-array-in-VMEM spec for the gridless kernels (everything here is tiny).
_VMEM = pl.BlockSpec(memory_space=pltpu.MemorySpace.VMEM)


# --------------------------------------------------------------------------
# Kernel bodies
# --------------------------------------------------------------------------
def _backbone_bn(img_ref, txt_ref, w_img_ref, w_txt_ref, gamma_ref, beta_ref):
    """Backbone stand-in projection + shared BatchNorm1d (training stats).

    Each modality keeps its own dense weight (no zero-padding to a common K).
    Matmuls run with bf16 inputs / f32 accumulation on the MXU; all BN math
    stays in f32.
    """
    f_img = jnp.dot(img_ref[...].astype(w_img_ref.dtype), w_img_ref[...],
                    preferred_element_type=jnp.float32)          # [B, 256]
    f_txt = jnp.dot(txt_ref[...].astype(w_txt_ref.dtype), w_txt_ref[...],
                    preferred_element_type=jnp.float32)          # [B, 256]

    gamma = gamma_ref[...]                                        # [1, 256]
    beta = beta_ref[...]                                          # [1, 256]

    def bn(f):
        # Two-pass batch mean / biased variance (robust to large means),
        # PyTorch eps = 1e-5, affine folded into one multiply-add.
        mean = jnp.mean(f, axis=0, keepdims=True)                 # [1, 256]
        c = f - mean
        var = jnp.mean(c * c, axis=0, keepdims=True)              # [1, 256]
        inv_std = jax.lax.rsqrt(var + BN_EPS)
        return c * (inv_std * gamma) + beta

    return bn(f_img), bn(f_txt)


def _feat_kernel(img_ref, txt_ref, w_img_ref, w_txt_ref, gamma_ref, beta_ref,
                 feat_i_ref, feat_t_ref):
    """label=None path: backbone + BN only (no head fetch / compute / store)."""
    y_i, y_t = _backbone_bn(img_ref, txt_ref, w_img_ref, w_txt_ref,
                            gamma_ref, beta_ref)
    feat_i_ref[...] = y_i.astype(feat_i_ref.dtype)
    feat_t_ref[...] = y_t.astype(feat_t_ref.dtype)


def _full_kernel(img_ref, txt_ref, w_img_ref, w_txt_ref, gamma_ref, beta_ref,
                 hw_ref, hb_ref, feat_i_ref, feat_t_ref, out_i_ref, out_t_ref):
    """label given: backbone + BN + shared Linear head on both modalities."""
    y_i, y_t = _backbone_bn(img_ref, txt_ref, w_img_ref, w_txt_ref,
                            gamma_ref, beta_ref)
    feat_i_ref[...] = y_i.astype(feat_i_ref.dtype)
    feat_t_ref[...] = y_t.astype(feat_t_ref.dtype)

    b = y_i.shape[0]
    # Merge both modalities into one M=2B head matmul (one MXU weight push),
    # bf16 inputs / f32 accumulation, lane-dense (128-wide) output.
    yy = jnp.concatenate([y_i, y_t], axis=0).astype(hw_ref.dtype)   # [2B, 256]
    logits = jnp.dot(yy, hw_ref[...],
                     preferred_element_type=jnp.float32) + hb_ref[...]  # [2B, HP]
    out_i_ref[...] = logits[:b].astype(out_i_ref.dtype)
    out_t_ref[...] = logits[b:].astype(out_t_ref.dtype)


# --------------------------------------------------------------------------
# pallas_call wrappers
# --------------------------------------------------------------------------
@jax.jit
def _features_call(img_flat, txt_flat, w_img_bf16, w_txt_bf16, gamma, beta):
    B = img_flat.shape[0]
    k_i, k_t = w_img_bf16.shape[0], w_txt_bf16.shape[0]
    cost = pl.CostEstimate(
        flops=int(2 * B * (k_i + k_t) * FEAT_DIM),
        transcendentals=int(2 * FEAT_DIM),
        bytes_accessed=int(img_flat.size * 4 + txt_flat.size * 4
                           + (w_img_bf16.size + w_txt_bf16.size) * 2
                           + (gamma.size + beta.size) * 4
                           + 2 * B * FEAT_DIM * 4),
    )
    return pl.pallas_call(
        _feat_kernel,
        out_shape=(jax.ShapeDtypeStruct((B, FEAT_DIM), jnp.float32),
                   jax.ShapeDtypeStruct((B, FEAT_DIM), jnp.float32)),
        in_specs=[_VMEM] * 6,
        out_specs=(_VMEM, _VMEM),
        cost_estimate=cost,
    )(img_flat, txt_flat, w_img_bf16, w_txt_bf16, gamma, beta)


@jax.jit
def _full_call(img_flat, txt_flat, w_img_bf16, w_txt_bf16, gamma, beta,
               head_w_pad, head_b_pad):
    B = img_flat.shape[0]
    k_i, k_t = w_img_bf16.shape[0], w_txt_bf16.shape[0]
    head_pad = head_w_pad.shape[1]
    cost = pl.CostEstimate(
        flops=int(2 * B * (k_i + k_t) * FEAT_DIM
                  + 2 * (2 * B) * FEAT_DIM * head_pad),
        transcendentals=int(2 * FEAT_DIM),
        bytes_accessed=int(img_flat.size * 4 + txt_flat.size * 4
                           + (w_img_bf16.size + w_txt_bf16.size) * 2
                           + (gamma.size + beta.size) * 4
                           + head_w_pad.size * 2 + head_b_pad.size * 4
                           + 2 * B * FEAT_DIM * 4
                           + 2 * B * head_pad * 4),
    )
    return pl.pallas_call(
        _full_kernel,
        out_shape=(jax.ShapeDtypeStruct((B, FEAT_DIM), jnp.float32),
                   jax.ShapeDtypeStruct((B, FEAT_DIM), jnp.float32),
                   jax.ShapeDtypeStruct((B, head_pad), jnp.float32),
                   jax.ShapeDtypeStruct((B, head_pad), jnp.float32)),
        in_specs=[_VMEM] * 8,
        out_specs=(_VMEM, _VMEM, _VMEM, _VMEM),
        cost_estimate=cost,
    )(img_flat, txt_flat, w_img_bf16, w_txt_bf16, gamma, beta,
      head_w_pad, head_b_pad)


def supervised_net_forward(im_1, im_1_b, huffman, huffman_b, params,
                           label=None):
    """Mirrors supervised_net.forward: backbone -> shared BN -> shared head."""
    B = im_1.shape[0]
    img_flat = im_1.reshape(B, -1).astype(jnp.float32)
    txt_flat = huffman.reshape(B, -1).astype(jnp.float32)

    if label is not None:
        feat_i, feat_t, out_i, out_t = _full_call(
            img_flat, txt_flat, params["w_img_bf16"], params["w_txt_bf16"],
            params["bn_gamma"], params["bn_beta"],
            params["head_w_pad"], params["head_b_pad"])
        return feat_i, out_i[:, :OUT_DIM], feat_t, out_t[:, :OUT_DIM]

    feat_i, feat_t = _features_call(
        img_flat, txt_flat, params["w_img_bf16"], params["w_txt_bf16"],
        params["bn_gamma"], params["bn_beta"])
    return feat_i, feat_t


# --------------------------------------------------------------------------
# Parameters
# --------------------------------------------------------------------------
def init_params(key, img_in_dim, txt_in_dim, out_dim=OUT_DIM):
    ks = jax.random.split(key, 6)
    head_pad = _round_up(out_dim, 128)

    # f32 master copies (used by the pure-JAX reference / training).
    w_img = jax.random.normal(ks[0], (img_in_dim, FEAT_DIM), jnp.float32) * 0.02
    w_txt = jax.random.normal(ks[1], (txt_in_dim, FEAT_DIM), jnp.float32) * 0.02
    bn_gamma = (jnp.ones((1, FEAT_DIM), jnp.float32)
                + 0.1 * jax.random.normal(ks[2], (1, FEAT_DIM), jnp.float32))
    bn_beta = 0.1 * jax.random.normal(ks[3], (1, FEAT_DIM), jnp.float32)
    head_w = jax.random.normal(ks[4], (FEAT_DIM, out_dim),
                               jnp.float32) * (1.0 / jnp.sqrt(FEAT_DIM))
    head_b = 0.01 * jax.random.normal(ks[5], (1, out_dim), jnp.float32)

    # Kernel-side parameters (built once, not per forward): bf16 weights in
    # HBM halve the dominant DMA; head padded to 128 lanes for dense stores.
    w_img_bf16 = w_img.astype(jnp.bfloat16)                       # [K_img, 256]
    w_txt_bf16 = w_txt.astype(jnp.bfloat16)                       # [K_txt, 256]
    head_w_pad = jnp.pad(head_w, ((0, 0), (0, head_pad - out_dim))
                         ).astype(jnp.bfloat16)                   # [256, 128]
    head_b_pad = jnp.pad(head_b, ((0, 0), (0, head_pad - out_dim)))  # [1, 128]

    return {
        "w_img": w_img, "w_txt": w_txt,
        "bn_gamma": bn_gamma, "bn_beta": bn_beta,
        "head_w": head_w, "head_b": head_b,
        "w_img_bf16": w_img_bf16, "w_txt_bf16": w_txt_bf16,
        "head_w_pad": head_w_pad, "head_b_pad": head_b_pad,
    }


# --------------------------------------------------------------------------
# Demo + correctness check
# --------------------------------------------------------------------------
if __name__ == "__main__":
    key = jax.random.PRNGKey(0)
    k_in, k_par = jax.random.split(key)
    kis = jax.random.split(k_in, 4)

    B, C, H, W = 8, 3, 16, 16     # image inputs (NCHW)
    S, D = 8, 32                  # huffman text inputs

    im_1 = jax.random.normal(kis[0], (B, C, H, W), jnp.float32)
    im_1_b = jax.random.normal(kis[1], (B, C, H, W), jnp.float32)
    huffman = jax.random.normal(kis[2], (B, S, D), jnp.float32)
    huffman_b = jax.random.normal(kis[3], (B, S, D), jnp.float32)
    label = jnp.zeros((B,), jnp.int32)

    params = init_params(k_par, img_in_dim=C * H * W, txt_in_dim=S * D)

    # label given: features + head logits for both modalities.
    img_bn, out1, txt_bn, out2 = supervised_net_forward(
        im_1, im_1_b, huffman, huffman_b, params, label=label)
    jax.block_until_ready((img_bn, out1, txt_bn, out2))

    # label=None: features only (head never computed).
    f_img, f_txt = supervised_net_forward(im_1, im_1_b, huffman, huffman_b,
                                          params)
    jax.block_until_ready((f_img, f_txt))

    # Pure-JAX f32 reference (highest matmul precision).
    hi = jax.lax.Precision.HIGHEST

    def ref_bn(x):
        m = x.mean(0, keepdims=True)
        v = ((x - m) ** 2).mean(0, keepdims=True)
        return ((x - m) / jnp.sqrt(v + BN_EPS)) * params["bn_gamma"] \
            + params["bn_beta"]

    img_f = jnp.dot(im_1.reshape(B, -1), params["w_img"], precision=hi)
    txt_f = jnp.dot(huffman.reshape(B, -1), params["w_txt"], precision=hi)
    ref_img_bn = ref_bn(img_f)
    ref_txt_bn = ref_bn(txt_f)
    ref_out1 = jnp.dot(ref_img_bn, params["head_w"], precision=hi) \
        + params["head_b"]
    ref_out2 = jnp.dot(ref_txt_bn, params["head_w"], precision=hi) \
        + params["head_b"]

    assert img_bn.shape == (B, FEAT_DIM) and out1.shape == (B, OUT_DIM)
    assert txt_bn.shape == (B, FEAT_DIM) and out2.shape == (B, OUT_DIM)
    assert f_img.shape == (B, FEAT_DIM) and f_txt.shape == (B, FEAT_DIM)

    # Backbone / head run with bf16 inputs and f32 accumulation in-kernel, so
    # tolerances are loosened a little against the all-f32 reference.
    assert jnp.allclose(img_bn, ref_img_bn, atol=2e-2, rtol=2e-2)
    assert jnp.allclose(txt_bn, ref_txt_bn, atol=2e-2, rtol=2e-2)
    assert jnp.allclose(f_img, ref_img_bn, atol=2e-2, rtol=2e-2)
    assert jnp.allclose(f_txt, ref_txt_bn, atol=2e-2, rtol=2e-2)
    assert jnp.allclose(out1, ref_out1, atol=5e-2, rtol=5e-2)
    assert jnp.allclose(out2, ref_out2, atol=5e-2, rtol=5e-2)

    print("KERNEL_OK")
</pallas_src>

<mosaic_0001>
module attributes {stable_mosaic.version = 11 : i64} {
  func.func @_full_kernel(%arg0: memref<8x768xf32, #tpu.memory_space<vmem>>, %arg1: memref<8x256xf32, #tpu.memory_space<vmem>>, %arg2: memref<768x256xbf16, #tpu.memory_space<vmem>>, %arg3: memref<256x256xbf16, #tpu.memory_space<vmem>>, %arg4: memref<1x256xf32, #tpu.memory_space<vmem>>, %arg5: memref<1x256xf32, #tpu.memory_space<vmem>>, %arg6: memref<256x128xbf16, #tpu.memory_space<vmem>>, %arg7: memref<1x128xf32, #tpu.memory_space<vmem>>, %arg8: memref<8x256xf32, #tpu.memory_space<vmem>>, %arg9: memref<8x256xf32, #tpu.memory_space<vmem>>, %arg10: memref<8x128xf32, #tpu.memory_space<vmem>>, %arg11: memref<8x128xf32, #tpu.memory_space<vmem>>) attributes {dimension_semantics = [], scalar_prefetch = 0 : i64, scratch_operands = 0 : i64, tpu.core_type = #tpu.core_type<tc>} {
    %c0 = arith.constant 0 : index
    %c0_0 = arith.constant 0 : index
    %0 = vector.load %arg0[%c0, %c0_0] : memref<8x768xf32, #tpu.memory_space<vmem>>, vector<8x768xf32>
    %1 = arith.truncf %0 : vector<8x768xf32> to vector<8x768xbf16>
    %c0_1 = arith.constant 0 : index
    %c0_2 = arith.constant 0 : index
    %2 = vector.load %arg2[%c0_1, %c0_2] : memref<768x256xbf16, #tpu.memory_space<vmem>>, vector<768x256xbf16>
    %cst = arith.constant dense<0.000000e+00> : vector<8x256xf32>
    %3 = tpu.matmul %1, %2, %cst {dimension_numbers = #tpu.dot_dimension_numbers<[1], [0], [0], [1], [0, 0, 1, 1], [], []>} : vector<8x768xbf16>, vector<768x256xbf16>, vector<8x256xf32> -> vector<8x256xf32>
    %c0_3 = arith.constant 0 : index
    %c0_4 = arith.constant 0 : index
    %4 = vector.load %arg1[%c0_3, %c0_4] : memref<8x256xf32, #tpu.memory_space<vmem>>, vector<8x256xf32>
    %5 = arith.truncf %4 : vector<8x256xf32> to vector<8x256xbf16>
    %c0_5 = arith.constant 0 : index
    %c0_6 = arith.constant 0 : index
    %6 = vector.load %arg3[%c0_5, %c0_6] : memref<256x256xbf16, #tpu.memory_space<vmem>>, vector<256x256xbf16>
    %cst_7 = arith.constant dense<0.000000e+00> : vector<8x256xf32>
    %7 = tpu.matmul %5, %6, %cst_7 {dimension_numbers = #tpu.dot_dimension_numbers<[1], [0], [0], [1], [0, 0, 1, 1], [], []>} : vector<8x256xbf16>, vector<256x256xbf16>, vector<8x256xf32> -> vector<8x256xf32>
    %c0_8 = arith.constant 0 : index
    %c0_9 = arith.constant 0 : index
    %8 = vector.load %arg4[%c0_8, %c0_9] : memref<1x256xf32, #tpu.memory_space<vmem>>, vector<1x256xf32>
    %c0_10 = arith.constant 0 : index
    %c0_11 = arith.constant 0 : index
    %9 = vector.load %arg5[%c0_10, %c0_11] : memref<1x256xf32, #tpu.memory_space<vmem>>, vector<1x256xf32>
    %cst_12 = arith.constant dense<0.000000e+00> : vector<256xf32>
    %10 = vector.multi_reduction <add>, %3, %cst_12 [0] : vector<8x256xf32> to vector<256xf32>
    %11 = vector.shape_cast %10 : vector<256xf32> to vector<1x256xf32>
    %cst_13 = arith.constant 8.000000e+00 : f32
    %12 = vector.broadcast %cst_13 : f32 to vector<1x256xf32>
    %13 = arith.divf %11, %12 : vector<1x256xf32>
    %14 = vector.broadcast %13 : vector<1x256xf32> to vector<8x256xf32>
    %15 = arith.subf %3, %14 : vector<8x256xf32>
    %16 = arith.mulf %15, %15 : vector<8x256xf32>
    %cst_14 = arith.constant dense<0.000000e+00> : vector<256xf32>
    %17 = vector.multi_reduction <add>, %16, %cst_14 [0] : vector<8x256xf32> to vector<256xf32>
    %18 = vector.shape_cast %17 : vector<256xf32> to vector<1x256xf32>
    %cst_15 = arith.constant 8.000000e+00 : f32
    %19 = vector.broadcast %cst_15 : f32 to vector<1x256xf32>
    %20 = arith.divf %18, %19 : vector<1x256xf32>
    %cst_16 = arith.constant 9.99999974E-6 : f32
    %21 = vector.broadcast %cst_16 : f32 to vector<1x256xf32>
    %22 = arith.addf %20, %21 : vector<1x256xf32>
    %23 = math.rsqrt %22 : vector<1x256xf32>
    %24 = arith.mulf %23, %8 : vector<1x256xf32>
    %25 = vector.broadcast %24 : vector<1x256xf32> to vector<8x256xf32>
    %26 = arith.mulf %15, %25 : vector<8x256xf32>
    %27 = vector.broadcast %9 : vector<1x256xf32> to vector<8x256xf32>
    %28 = arith.addf %26, %27 : vector<8x256xf32>
    %cst_17 = arith.constant dense<0.000000e+00> : vector<256xf32>
    %29 = vector.multi_reduction <add>, %7, %cst_17 [0] : vector<8x256xf32> to vector<256xf32>
    %30 = vector.shape_cast %29 : vector<256xf32> to vector<1x256xf32>
    %cst_18 = arith.constant 8.000000e+00 : f32
    %31 = vector.broadcast %cst_18 : f32 to vector<1x256xf32>
    %32 = arith.divf %30, %31 : vector<1x256xf32>
    %33 = vector.broadcast %32 : vector<1x256xf32> to vector<8x256xf32>
    %34 = arith.subf %7, %33 : vector<8x256xf32>
    %35 = arith.mulf %34, %34 : vector<8x256xf32>
    %cst_19 = arith.constant dense<0.000000e+00> : vector<256xf32>
    %36 = vector.multi_reduction <add>, %35, %cst_19 [0] : vector<8x256xf32> to vector<256xf32>
    %37 = vector.shape_cast %36 : vector<256xf32> to vector<1x256xf32>
    %cst_20 = arith.constant 8.000000e+00 : f32
    %38 = vector.broadcast %cst_20 : f32 to vector<1x256xf32>
    %39 = arith.divf %37, %38 : vector<1x256xf32>
    %cst_21 = arith.constant 9.99999974E-6 : f32
    %40 = vector.broadcast %cst_21 : f32 to vector<1x256xf32>
    %41 = arith.addf %39, %40 : vector<1x256xf32>
    %42 = math.rsqrt %41 : vector<1x256xf32>
    %43 = arith.mulf %42, %8 : vector<1x256xf32>
    %44 = vector.broadcast %43 : vector<1x256xf32> to vector<8x256xf32>
    %45 = arith.mulf %34, %44 : vector<8x256xf32>
    %46 = vector.broadcast %9 : vector<1x256xf32> to vector<8x256xf32>
    %47 = arith.addf %45, %46 : vector<8x256xf32>
    %c0_22 = arith.constant 0 : index
    %c0_23 = arith.constant 0 : index
    %48 = vector.load %arg8[%c0_22, %c0_23] : memref<8x256xf32, #tpu.memory_space<vmem>>, vector<8x256xf32>
    tpu.vector_store %arg8[%c0_22, %c0_23], %28 {strides = array<i32>} : memref<8x256xf32, #tpu.memory_space<vmem>>, vector<8x256xf32>,
    %c0_24 = arith.constant 0 : index
    %c0_25 = arith.constant 0 : index
    %49 = vector.load %arg9[%c0_24, %c0_25] : memref<8x256xf32, #tpu.memory_space<vmem>>, vector<8x256xf32>
    tpu.vector_store %arg9[%c0_24, %c0_25], %47 {strides = array<i32>} : memref<8x256xf32, #tpu.memory_space<vmem>>, vector<8x256xf32>,
    %50 = tpu.concatenate %28, %47 in 0 : vector<8x256xf32>, vector<8x256xf32> -> vector<16x256xf32>
    %51 = arith.truncf %50 : vector<16x256xf32> to vector<16x256xbf16>
    %c0_26 = arith.constant 0 : index
    %c0_27 = arith.constant 0 : index
    %52 = vector.load %arg6[%c0_26, %c0_27] : memref<256x128xbf16, #tpu.memory_space<vmem>>, vector<256x128xbf16>
    %cst_28 = arith.constant dense<0.000000e+00> : vector<16x128xf32>
    %53 = tpu.matmul %51, %52, %cst_28 {dimension_numbers = #tpu.dot_dimension_numbers<[1], [0], [0], [1], [0, 0, 1, 1], [], []>} : vector<16x256xbf16>, vector<256x128xbf16>, vector<16x128xf32> -> vector<16x128xf32>
    %c0_29 = arith.constant 0 : index
    %c0_30 = arith.constant 0 : index
    %54 = vector.load %arg7[%c0_29, %c0_30] : memref<1x128xf32, #tpu.memory_space<vmem>>, vector<1x128xf32>
    %55 = vector.broadcast %54 : vector<1x128xf32> to vector<16x128xf32>
    %56 = arith.addf %53, %55 : vector<16x128xf32>
    %57 = vector.extract_strided_slice %56 {offsets = [0, 0], sizes = [8, 128], strides = [1, 1]} : vector<16x128xf32> to vector<8x128xf32>
    %c0_31 = arith.constant 0 : index
    %c0_32 = arith.constant 0 : index
    %58 = vector.load %arg10[%c0_31, %c0_32] : memref<8x128xf32, #tpu.memory_space<vmem>>, vector<8x128xf32>
    tpu.vector_store %arg10[%c0_31, %c0_32], %57 {strides = array<i32>} : memref<8x128xf32, #tpu.memory_space<vmem>>, vector<8x128xf32>,
    %59 = vector.extract_strided_slice %56 {offsets = [8, 0], sizes = [8, 128], strides = [1, 1]} : vector<16x128xf32> to vector<8x128xf32>
    %c0_33 = arith.constant 0 : index
    %c0_34 = arith.constant 0 : index
    %60 = vector.load %arg11[%c0_33, %c0_34] : memref<8x128xf32, #tpu.memory_space<vmem>>, vector<8x128xf32>
    tpu.vector_store %arg11[%c0_33, %c0_34], %59 {strides = array<i32>} : memref<8x128xf32, #tpu.memory_space<vmem>>, vector<8x128xf32>,
    return
  }
}

</mosaic_0001>

<bundles_post_ra>
// kernel: _full_call.1
= control target key start
LH: loop header
LB: loop body
LE: loop exit
PB: predicated region body
PF: predicated region fallthrough
CT: control target
= control target key end

     0   :  { %17 = vsyncpa [#allocation3], 0  ;;  %s2631_s0 = inlined_call_operand.hbm [shape: f32[8,768], index: 0, kind: input, shape index: {}]   ;;  %s2632_s1 = inlined_call_operand.hbm [shape: f32[8,256], index: 1, kind: input, shape index: {}]   ;;  %s2633_s2 = inlined_call_operand.hbm [shape: bf16[768,256], index: 2, kind: input, shape index: {}]   ;;  %s2634_s3 = inlined_call_operand.hbm [shape: bf16[256,256], index: 3, kind: input, shape index: {}]   ;;  %s2635_s4 = inlined_call_operand.vmem [shape: f32[1,256], index: 4, kind: input, shape index: {}]   ;;  %s2636_s5 = inlined_call_operand.vmem [shape: f32[1,256], index: 5, kind: input, shape index: {}]   ;;  %s2637_s6 = inlined_call_operand.hbm [shape: bf16[256,128], index: 6, kind: input, shape index: {}]   ;;  %s2638_s7 = inlined_call_operand.vmem [shape: f32[1,128], index: 7, kind: input, shape index: {}]   ;;  %s2639_s8 = inlined_call_operand.hbm [shape: f32[8,256], index: 8, kind: output, shape index: {0}]   ;;  %s2640_s9 = inlined_call_operand.hbm [shape: f32[8,256], index: 9, kind: output, shape index: {1}]   ;;  %s2641_s10 = inlined_call_operand.hbm [shape: f32[8,128], index: 10, kind: output, shape index: {2}]   ;;  %s2642_s11 = inlined_call_operand.hbm [shape: f32[8,128], index: 11, kind: output, shape index: {3}]  }
   0x1   :  { %18 = vsyncpa [#allocation6], 0 }
   0x2   :  { %19 = vsyncpa [#allocation9], 0 }
   0x3   :  { %20 = vsyncpa [#allocation4], 0 }
   0x4   :  { %21 = vsyncpa [#allocation13], 0  ;;  %s39_s19 = sshll.u32 %s2632_s1, 4  ;;  %s40_s19 = int_to_ptr.hbm [resolvable:$true] %s39_s19 }
   0x5   :  { %22 = vsyncpa [#allocation16], 0  ;;  %s2452_s20 = smov [#allocation5]   ;;  %s62_s24 = sshll.u32 %s2634_s3, 4  ;;  %s63_s24 = int_to_ptr.hbm [resolvable:$true] %s62_s24 }
   0x6   :  { %s41_s21 = sshll.u32 %s2452_s20, 4  ;;  %s2453_s25 = smov [#allocation8]   ;;  %s42_s21 = int_to_ptr.vmem [resolvable:$true] %s41_s21 }
   0x7   :  { %44 = dma.hbm_to_vmem [thread:$0]  %s40_s19, 256, %s42_s21, [#allocation6]  }
   0x8   :  { %s64_s26 = sshll.u32 %s2453_s25, 4  ;;  %s28_s29 = sshll.u32 %s2631_s0, 4  ;;  %s65_s26 = int_to_ptr.vmem [resolvable:$true] %s64_s26  ;;  %s29_s29 = int_to_ptr.hbm [resolvable:$true] %s28_s29 }
   0x9   :  { %s2454_s1 = smov 128   ;;  %s2455_s30 = smov 8  }
   0xa   :  { %70 = dma.hbm_to_vmem [thread:$0]  %s63_s24, 4096, %s65_s26, [#allocation9], %s2454_s1, %s2454_s1, %s2455_s30  }
   0xb   :  { %s49_s14 = sshll.u32 %s2633_s2, 4  ;;  %s2456_s15 = smov [#allocation2]   ;;  %s50_s14 = int_to_ptr.hbm [resolvable:$true] %s49_s14 }
   0xc   :  { %s30_s16 = sshll.u32 %s2456_s15, 4  ;;  %s2457_s3 = smov [#allocation7]   ;;  %s31_s16 = int_to_ptr.vmem [resolvable:$true] %s30_s16 }
   0xd   :  { %33 = dma.hbm_to_vmem [thread:$0]  %s29_s29, 768, %s31_s16, [#allocation3]  }
   0xe   :  { %s51_s17 = sshll.u32 %s2457_s3, 4  ;;  %s79_s0 = sshll.u32 %s2637_s6, 4  ;;  %s52_s17 = int_to_ptr.vmem [resolvable:$true] %s51_s17  ;;  %s80_s0 = int_to_ptr.hbm [resolvable:$true] %s79_s0 }
   0xf   :  { %57 = dma.hbm_to_vmem [thread:$0]  %s50_s14, 12288, %s52_s17, [#allocation6], %s2454_s1, %s2454_s1, %s2455_s30  }
  0x10   :  { %s2458_s20 = smov [#allocation10]   ;;  %s2459_s22 = smov 64  }
  0x11   :  { %s81_s21 = sshll.u32 %s2458_s20, 4  ;;  %s2460_s23 = smov 4   ;;  %s82_s21 = int_to_ptr.vmem [resolvable:$true] %s81_s21 }
  0x12   :  { %87 = dma.hbm_to_vmem [thread:$0]  %s80_s0, 2048, %s82_s21, [#allocation9], %s2459_s22, %s2459_s22, %s2460_s23  }
  0x13   :  { %2440 = dma.done.wait [#allocation3], 768  }
  0x14   :  { %2441 = vsyncadd [#allocation3], 4294966528 }
  0x15   :  { %2442 = dma.done.wait [#allocation6], 12544  }
  0x16   :  { %2443 = vsyncadd [#allocation6], 4294954752 }
  0x17   :  { %2444 = dma.done.wait [#allocation9], 6144  }
  0x18   :  { %2445 = vsyncadd [#allocation9], 4294961152  ;;  %v1537_v0 = vld [vmem:[#allocation7 + $0x70] sm:$0xf]  ;;  %v2070_v1 = vld [vmem:[#allocation7 + $0x74] sm:$0xf0] }
  0x19   :  { %v1601_v2 = vld [vmem:[#allocation7 + $0xf0] sm:$0xf]  ;;  %v1538_v3 = vor.u32 %v2070_v1, %v1537_v0  ;;  %v2086_v4 = vld [vmem:[#allocation7 + $0xf4] sm:$0xf0]  ;;  %v1529_v11 = vld [vmem:[#allocation7 + $0x60] sm:$0xf] }
  0x1a   :  { %v1665_v5 = vld [vmem:[#allocation7 + $0x170] sm:$0xf]  ;;  %v2102_v6 = vld [vmem:[#allocation7 + $0x174] sm:$0xf0]  ;;  %v1602_v7 = vor.u32 %v2086_v4, %v1601_v2  ;;  %v2068_v13 = vld [vmem:[#allocation7 + $0x64] sm:$0xf0] }
  0x1b   :  { %v1666_v8 = vor.u32 %v2102_v6, %v1665_v5  ;;  %v1729_v9 = vld [vmem:[#allocation7 + $0x1f0] sm:$0xf]  ;;  %v2118_v10 = vld [vmem:[#allocation7 + $0x1f4] sm:$0xf0]  ;;  %698 = vmatpush.bf16.msra.mxu0 %v1538_v3  ;;  %v1593_v14 = vld [vmem:[#allocation7 + $0xe0] sm:$0xf]  ;;  %v1530_v16 = vor.u32 %v2068_v13, %v1529_v11 }
  0x1c   :  { %v1730_v12 = vor.u32 %v2118_v10, %v1729_v9  ;;  %v2084_v15 = vld [vmem:[#allocation7 + $0xe4] sm:$0xf0]  ;;  %711 = vmatpush.bf16.msra.mxu1 %v1602_v7  ;;  %v1657_v18 = vld [vmem:[#allocation7 + $0x160] sm:$0xf]  ;;  %v1521_v23 = vld [vmem:[#allocation7 + $0x50] sm:$0xf] }
  0x1d   :  { %724 = vmatpush.bf16.msra.mxu2 %v1666_v8  ;;  %v1594_v17 = vor.u32 %v2084_v15, %v1593_v14  ;;  %v2100_v19 = vld [vmem:[#allocation7 + $0x164] sm:$0xf0]  ;;  %v1721_v20 = vld [vmem:[#allocation7 + $0x1e0] sm:$0xf]  ;;  %v2066_v24 = vld [vmem:[#allocation7 + $0x54] sm:$0xf0] }
  0x1e   :  { %737 = vmatpush.bf16.msra.mxu3 %v1730_v12  ;;  %v1658_v21 = vor.u32 %v2100_v19, %v1657_v18  ;;  %v2116_v22 = vld [vmem:[#allocation7 + $0x1e4] sm:$0xf0]  ;;  %v1585_v26 = vld [vmem:[#allocation7 + $0xd0] sm:$0xf]  ;;  %v2082_v27 = vld [vmem:[#allocation7 + $0xd4] sm:$0xf0]  ;;  %v1522_v29 = vor.u32 %v2066_v24, %v1521_v23 }
  0x1f   :  { %v1722_v25 = vor.u32 %v2116_v22, %v1721_v20  ;;  %v1649_v28 = vld [vmem:[#allocation7 + $0x150] sm:$0xf]  ;;  %699 = vmatpush.bf16.msra.mxu0 %v1530_v16  ;;  %v2098_v30 = vld [vmem:[#allocation7 + $0x154] sm:$0xf0]  ;;  %v1586_v33 = vor.u32 %v2082_v27, %v1585_v26  ;;  %v1513_v35 = vld [vmem:[#allocation7 + $0x40] sm:$0xf] }
  0x20   :  { %v1713_v31 = vld [vmem:[#allocation7 + $0x1d0] sm:$0xf]  ;;  %v2114_v32 = vld [vmem:[#allocation7 + $0x1d4] sm:$0xf0]  ;;  %712 = vmatpush.bf16.msra.mxu1 %v1594_v17  ;;  %v1650_v34 = vor.u32 %v2098_v30, %v1649_v28  ;;  %v2064_v36 = vld [vmem:[#allocation7 + $0x44] sm:$0xf0] }
  0x21   :  { %725 = vmatpush.bf16.msra.mxu2 %v1658_v21  ;;  %v1577_v37 = vld [vmem:[#allocation7 + $0xc0] sm:$0xf]  ;;  %v1714_v38 = vor.u32 %v2114_v32, %v1713_v31  ;;  %v2080_v39 = vld [vmem:[#allocation7 + $0xc4] sm:$0xf0]  ;;  %v1514_v44 = vor.u32 %v2064_v36, %v1513_v35  ;;  %v1505_v47 = vld [vmem:[#allocation7 + $0x30] sm:$0xf] }
  0x22   :  { %738 = vmatpush.bf16.msra.mxu3 %v1722_v25  ;;  %v1641_v40 = vld [vmem:[#allocation7 + $0x140] sm:$0xf]  ;;  %v2096_v41 = vld [vmem:[#allocation7 + $0x144] sm:$0xf0]  ;;  %v1578_v45 = vor.u32 %v2080_v39, %v1577_v37  ;;  %v2062_v48 = vld [vmem:[#allocation7 + $0x34] sm:$0xf0] }
  0x23   :  { %v1705_v42 = vld [vmem:[#allocation7 + $0x1c0] sm:$0xf]  ;;  %v2112_v43 = vld [vmem:[#allocation7 + $0x1c4] sm:$0xf0]  ;;  %700 = vmatpush.bf16.msra.mxu0 %v1522_v29  ;;  %v1642_v46 = vor.u32 %v2096_v41, %v1641_v40  ;;  %v1569_v49 = vld [vmem:[#allocation7 + $0xb0] sm:$0xf]  ;;  %v1506_v56 = vor.u32 %v2062_v48, %v1505_v47 }
  0x24   :  { %713 = vmatpush.bf16.msra.mxu1 %v1586_v33  ;;  %v1706_v50 = vor.u32 %v2112_v43, %v1705_v42  ;;  %v2078_v51 = vld [vmem:[#allocation7 + $0xb4] sm:$0xf0]  ;;  %v1633_v52 = vld [vmem:[#allocation7 + $0x130] sm:$0xf]  ;;  %v1497_v59 = vld [vmem:[#allocation7 + $0x20] sm:$0xf] }
  0x25   :  { %726 = vmatpush.bf16.msra.mxu2 %v1650_v34  ;;  %v2094_v53 = vld [vmem:[#allocation7 + $0x134] sm:$0xf0]  ;;  %v1697_v54 = vld [vmem:[#allocation7 + $0x1b0] sm:$0xf]  ;;  %v1570_v57 = vor.u32 %v2078_v51, %v1569_v49  ;;  %v2060_v60 = vld [vmem:[#allocation7 + $0x24] sm:$0xf0] }
  0x26   :  { %739 = vmatpush.bf16.msra.mxu3 %v1714_v38  ;;  %v2110_v55 = vld [vmem:[#allocation7 + $0x1b4] sm:$0xf0]  ;;  %v1634_v58 = vor.u32 %v2094_v53, %v1633_v52  ;;  %v1561_v61 = vld [vmem:[#allocation7 + $0xa0] sm:$0xf]  ;;  %v2076_v63 = vld [vmem:[#allocation7 + $0xa4] sm:$0xf0]  ;;  %v1498_v4 = vor.u32 %v2060_v60, %v1497_v59 }
  0x27   :  { %701 = vmatpush.bf16.msra.mxu0 %v1514_v44  ;;  %v1698_v62 = vor.u32 %v2110_v55, %v1697_v54  ;;  %v1625_v0 = vld [vmem:[#allocation7 + $0x120] sm:$0xf]  ;;  %v2092_v1 = vld [vmem:[#allocation7 + $0x124] sm:$0xf0]  ;;  %v1562_v5 = vor.u32 %v2076_v63, %v1561_v61  ;;  %v1489_v7 = vld [vmem:[#allocation7 + $0x10] sm:$0xf] }
  0x28   :  { %714 = vmatpush.bf16.msra.mxu1 %v1578_v45  ;;  %v1689_v2 = vld [vmem:[#allocation7 + $0x1a0] sm:$0xf]  ;;  %v2108_v3 = vld [vmem:[#allocation7 + $0x1a4] sm:$0xf0]  ;;  %v1626_v6 = vor.u32 %v2092_v1, %v1625_v0  ;;  %v2058_v8 = vld [vmem:[#allocation7 + $0x14] sm:$0xf0] }
  0x29   :  { %727 = vmatpush.bf16.msra.mxu2 %v1642_v46  ;;  %v1553_v9 = vld [vmem:[#allocation7 + $0x90] sm:$0xf]  ;;  %v1690_v10 = vor.u32 %v2108_v3, %v1689_v2  ;;  %v2074_v11 = vld [vmem:[#allocation7 + $0x94] sm:$0xf0]  ;;  %v1490_v16 = vor.u32 %v2058_v8, %v1489_v7  ;;  %v1481_v17 = vld [vmem:[#allocation7] sm:$0xf] }
  0x2a   :  { %740 = vmatpush.bf16.msra.mxu3 %v1706_v50  ;;  %v1617_v12 = vld [vmem:[#allocation7 + $0x110] sm:$0xf]  ;;  %v2090_v13 = vld [vmem:[#allocation7 + $0x114] sm:$0xf0]  ;;  %v2056_v18 = vld [vmem:[#allocation7 + $0x4] sm:$0xf0]  ;;  %v1554_v19 = vor.u32 %v2074_v11, %v1553_v9 }
  0x2b   :  { %702 = vmatpush.bf16.msra.mxu0 %v1506_v56  ;;  %v1681_v14 = vld [vmem:[#allocation7 + $0x190] sm:$0xf]  ;;  %v2106_v15 = vld [vmem:[#allocation7 + $0x194] sm:$0xf0]  ;;  %v1618_v20 = vor.u32 %v2090_v13, %v1617_v12  ;;  %v1545_v21 = vld [vmem:[#allocation7 + $0x80] sm:$0xf]  ;;  %v1482_v31 = vor.u32 %v2056_v18, %v1481_v17 }
  0x2c   :  { %715 = vmatpush.bf16.msra.mxu1 %v1570_v57  ;;  %v2072_v22 = vld [vmem:[#allocation7 + $0x84] sm:$0xf0]  ;;  %v1609_v23 = vld [vmem:[#allocation7 + $0x100] sm:$0xf]  ;;  %v1682_v24 = vor.u32 %v2106_v15, %v1681_v14  ;;  %v1793_v28 = vld [vmem:[#allocation7 + $0x270] sm:$0xf] }
  0x2d   :  { %728 = vmatpush.bf16.msra.mxu2 %v1634_v58  ;;  %v2088_v25 = vld [vmem:[#allocation7 + $0x104] sm:$0xf0]  ;;  %v1673_v26 = vld [vmem:[#allocation7 + $0x180] sm:$0xf]  ;;  %v2134_v29 = vld [vmem:[#allocation7 + $0x274] sm:$0xf0]  ;;  %v1546_v35 = vor.u32 %v2072_v22, %v1545_v21 }
  0x2e   :  { %741 = vmatpush.bf16.msra.mxu3 %v1698_v62  ;;  %v2104_v27 = vld [vmem:[#allocation7 + $0x184] sm:$0xf0]  ;;  %v1857_v30 = vld [vmem:[#allocation7 + $0x2f0] sm:$0xf]  ;;  %v2150_v32 = vld [vmem:[#allocation7 + $0x2f4] sm:$0xf0]  ;;  %v1610_v36 = vor.u32 %v2088_v25, %v1609_v23  ;;  %v1794_v40 = vor.u32 %v2134_v29, %v1793_v28 }
  0x2f   :  { %703 = vmatpush.bf16.msra.mxu0 %v1498_v4  ;;  %v2069_v33 = vld [vmem:[#allocation7 + $0x74] sm:$0xf]  ;;  %v1539_v34 = vld [vmem:[#allocation7 + $0x78] sm:$0xf0]  ;;  %v1674_v39 = vor.u32 %v2104_v27, %v1673_v26  ;;  %v1858_v41 = vor.u32 %v2150_v32, %v1857_v30  ;;  %v1785_v43 = vld [vmem:[#allocation7 + $0x260] sm:$0xf] }
  0x30   :  { %716 = vmatpush.bf16.msra.mxu1 %v1562_v5  ;;  %v2085_v37 = vld [vmem:[#allocation7 + $0xf4] sm:$0xf]  ;;  %v1603_v38 = vld [vmem:[#allocation7 + $0xf8] sm:$0xf0]  ;;  %v1542_v42 = vor.u32 %v2069_v33, %v1539_v34  ;;  %v2132_v44 = vld [vmem:[#allocation7 + $0x264] sm:$0xf0] }
  0x31   :  { %729 = vmatpush.bf16.msra.mxu2 %v1626_v6  ;;  %v1849_v45 = vld [vmem:[#allocation7 + $0x2e0] sm:$0xf]  ;;  %v1606_v46 = vor.u32 %v2085_v37, %v1603_v38  ;;  %v2148_v47 = vld [vmem:[#allocation7 + $0x2e4] sm:$0xf0]  ;;  %v2067_v48 = vld [vmem:[#allocation7 + $0x64] sm:$0xf]  ;;  %v1786_v53 = vor.u32 %v2132_v44, %v1785_v43 }
  0x32   :  { %742 = vmatpush.bf16.msra.mxu3 %v1690_v10  ;;  %v1531_v49 = vld [vmem:[#allocation7 + $0x68] sm:$0xf0]  ;;  %v2083_v50 = vld [vmem:[#allocation7 + $0xe4] sm:$0xf]  ;;  %v1777_v54 = vld [vmem:[#allocation7 + $0x250] sm:$0xf]  ;;  %v1850_v56 = vor.u32 %v2148_v47, %v1849_v45 }
  0x33   :  { %704 = vmatpush.bf16.msra.mxu0 %v1490_v16  ;;  %v1595_v51 = vld [vmem:[#allocation7 + $0xe8] sm:$0xf0]  ;;  %v110_v52 = vld [vmem:[#allocation2] sm:$0xff]  ;;  %v1534_v57 = vor.u32 %v2067_v48, %v1531_v49  ;;  %v2130_v58 = vld [vmem:[#allocation7 + $0x254] sm:$0xf0]  ;;  %s1431_s28 = sshll.u32 %s2640_s9, 4  ;;  %s1432_s28 = int_to_ptr.hbm [resolvable:$true] %s1431_s28 }
  0x34   :  { %717 = vmatpush.bf16.msra.mxu1 %v1554_v19  ;;  %v2541_v55 = vpack.c.bf16 %v110_v52, %v110_v52  ;;  %v1841_v59 = vld [vmem:[#allocation7 + $0x2d0] sm:$0xf]  ;;  %v2146_v60 = vld [vmem:[#allocation7 + $0x2d4] sm:$0xf0]  ;;  %v1598_v61 = vor.u32 %v2083_v50, %v1595_v51  ;;  %v2065_v62 = vld [vmem:[#allocation7 + $0x54] sm:$0xf]  ;;  %v1778_v4 = vor.u32 %v2130_v58, %v1777_v54 }
  0x35   :  { %730 = vmatpush.bf16.msra.mxu2 %v1618_v20  ;;  %v1523_v63 = vld [vmem:[#allocation7 + $0x58] sm:$0xf0]  ;;  %v111_v0 = vld [vmem:[#allocation2 + $0x8] sm:$0xff]  ;;  %v2081_v1 = vld [vmem:[#allocation7 + $0xd4] sm:$0xf]  ;;  %v1842_v7 = vor.u32 %v2146_v60, %v1841_v59  ;;  %s1420_s30 = sshll.u32 %s2639_s8, 4  ;;  %s1421_s30 = int_to_ptr.hbm [resolvable:$true] %s1420_s30 }
  0x36   :  { %743 = vmatpush.bf16.msra.mxu3 %v1682_v24  ;;  %v1587_v2 = vld [vmem:[#allocation7 + $0xd8] sm:$0xf0]  ;;  %v2544_v3 = vpack.c.bf16 %v111_v0, %v111_v0  ;;  %v1769_v5 = vld [vmem:[#allocation7 + $0x240] sm:$0xf]  ;;  %v2128_v6 = vld [vmem:[#allocation7 + $0x244] sm:$0xf0]  ;;  %v1526_v8 = vor.u32 %v2065_v62, %v1523_v63 }
  0x37   :  { %705 = vmatpush.bf16.msra.mxu0 %v1482_v31  ;;  %v1833_v9 = vld [vmem:[#allocation7 + $0x2c0] sm:$0xf]  ;;  %v112_v10 = vld [vmem:[#allocation2 + $0x10] sm:$0xff]  ;;  %v113_v11 = vld [vmem:[#allocation2 + $0x18] sm:$0xff]  ;;  %v1590_v12 = vor.u32 %v2081_v1, %v1587_v2  ;;  %v1770_v20 = vor.u32 %v2128_v6, %v1769_v5  ;;  %s2463_s12 = smov [#allocation11]   ;;  %s2464_s16 = smov [#allocation14]  }
  0x38   :  { %718 = vmatpush.bf16.msra.mxu1 %v1546_v35  ;;  %v2144_v13 = vld [vmem:[#allocation7 + $0x2c4] sm:$0xf0]  ;;  %v2063_v14 = vld [vmem:[#allocation7 + $0x44] sm:$0xf]  ;;  %v1515_v15 = vld [vmem:[#allocation7 + $0x48] sm:$0xf0]  ;;  %v2547_v16 = vpack.c.bf16 %v112_v10, %v112_v10  ;;  %v2549_v19 = vpack.c.bf16 %v113_v11, %v113_v11 }
  0x39   :  { %731 = vmatpush.bf16.msra.mxu2 %v1610_v36  ;;  %v2079_v17 = vld [vmem:[#allocation7 + $0xc4] sm:$0xf]  ;;  %v1579_v18 = vld [vmem:[#allocation7 + $0xc8] sm:$0xf0]  ;;  %v1834_v21 = vor.u32 %v2144_v13, %v1833_v9  ;;  %v1518_v22 = vor.u32 %v2063_v14, %v1515_v15  ;;  %v1761_v23 = vld [vmem:[#allocation7 + $0x230] sm:$0xf] }
  0x3a   :  { %744 = vmatpush.bf16.msra.mxu3 %v1674_v39  ;;  %706 = vmatmul.bf16.vlgmr.msra.gmra.mxu0 %v2541_v55  ;;  %v2126_v24 = vld [vmem:[#allocation7 + $0x234] sm:$0xf0]  ;;  %v1825_v25 = vld [vmem:[#allocation7 + $0x2b0] sm:$0xf]  ;;  %v1582_v26 = vor.u32 %v2079_v17, %v1579_v18  ;;  %v2061_v28 = vld [vmem:[#allocation7 + $0x34] sm:$0xf] }
  0x3b   :  { %750 = vmatpush.bf16.msrb.mxu0 %v1794_v40  ;;  %719 = vmatmul.bf16.vlgmr.msra.gmra.mxu1 %v2544_v3  ;;  %v2142_v27 = vld [vmem:[#allocation7 + $0x2b4] sm:$0xf0]  ;;  %v1507_v29 = vld [vmem:[#allocation7 + $0x38] sm:$0xf0]  ;;  %v2077_v30 = vld [vmem:[#allocation7 + $0xb4] sm:$0xf]  ;;  %v1762_v32 = vor.u32 %v2126_v24, %v1761_v23 }
  0x3c   :  { %763 = vmatpush.bf16.msrb.mxu1 %v1858_v41  ;;  %732 = vmatmul.bf16.vlgmr.msra.gmra.mxu2 %v2547_v16  ;;  %v1571_v31 = vld [vmem:[#allocation7 + $0xb8] sm:$0xf0]  ;;  %v1826_v33 = vor.u32 %v2142_v27, %v1825_v25  ;;  %v1510_v34 = vor.u32 %v2061_v28, %v1507_v29  ;;  %v1753_v35 = vld [vmem:[#allocation7 + $0x220] sm:$0xf]  ;;  %v2124_v36 = vld [vmem:[#allocation7 + $0x224] sm:$0xf0] }
  0x3d   :  { %776 = vmatpush.bf16.msrb.mxu2 %v1542_v42  ;;  %745 = vmatmul.bf16.vlgmr.msra.gmra.mxu3 %v2549_v19  ;;  %v1817_v37 = vld [vmem:[#allocation7 + $0x2a0] sm:$0xf]  ;;  %v1574_v38 = vor.u32 %v2077_v30, %v1571_v31  ;;  %v2140_v39 = vld [vmem:[#allocation7 + $0x2a4] sm:$0xf0]  ;;  %v2059_v40 = vld [vmem:[#allocation7 + $0x24] sm:$0xf]  ;;  %v1754_v44 = vor.u32 %v2124_v36, %v1753_v35 }
  0x3e   :  { %789 = vmatpush.bf16.msrb.mxu3 %v1606_v46  ;;  %v1499_v41 = vld [vmem:[#allocation7 + $0x28] sm:$0xf0]  ;;  %v2075_v42 = vld [vmem:[#allocation7 + $0xa4] sm:$0xf]  ;;  %v1818_v45 = vor.u32 %v2140_v39, %v1817_v37  ;;  %v1745_v47 = vld [vmem:[#allocation7 + $0x210] sm:$0xf] }
  0x3f   :  { %751 = vmatpush.bf16.msrb.mxu0 %v1786_v53  ;;  %v1563_v43 = vld [vmem:[#allocation7 + $0xa8] sm:$0xf0]  ;;  %v1502_v46 = vor.u32 %v2059_v40, %v1499_v41  ;;  %v2122_v48 = vld [vmem:[#allocation7 + $0x214] sm:$0xf0]  ;;  %v1809_v49 = vld [vmem:[#allocation7 + $0x290] sm:$0xf] }
  0x40   :  { %764 = vmatpush.bf16.msrb.mxu1 %v1850_v56  ;;  %v1566_v50 = vor.u32 %v2075_v42, %v1563_v43  ;;  %v2138_v51 = vld [vmem:[#allocation7 + $0x294] sm:$0xf0]  ;;  %v2057_v52 = vld [vmem:[#allocation7 + $0x14] sm:$0xf]  ;;  %v1491_v53 = vld [vmem:[#allocation7 + $0x18] sm:$0xf0] }
  0x41   :  { %777 = vmatpush.bf16.msrb.mxu2 %v1534_v57  ;;  %v2073_v54 = vld [vmem:[#allocation7 + $0x94] sm:$0xf]  ;;  %v1555_v56 = vld [vmem:[#allocation7 + $0x98] sm:$0xf0]  ;;  %v1746_v57 = vor.u32 %v2122_v48, %v1745_v47  ;;  %v1737_v58 = vld [vmem:[#allocation7 + $0x200] sm:$0xf]  ;;  %v1810_v60 = vor.u32 %v2138_v51, %v1809_v49 }
  0x42   :  { %790 = vmatpush.bf16.msrb.mxu3 %v1598_v61  ;;  %v2120_v59 = vld [vmem:[#allocation7 + $0x204] sm:$0xf0]  ;;  %v1494_v61 = vor.u32 %v2057_v52, %v1491_v53  ;;  %v1801_v62 = vld [vmem:[#allocation7 + $0x280] sm:$0xf]  ;;  %v2055_v0 = vld [vmem:[#allocation7 + $0x4] sm:$0xf]  ;;  %v1558_v1 = vor.u32 %v2073_v54, %v1555_v56 }
  0x43   :  { %752 = vmatpush.bf16.msrb.mxu0 %v1778_v4  ;;  %v2136_v63 = vld [vmem:[#allocation7 + $0x284] sm:$0xf0]  ;;  %v1483_v2 = vld [vmem:[#allocation7 + $0x8] sm:$0xf0]  ;;  %v2071_v4 = vld [vmem:[#allocation7 + $0x84] sm:$0xf]  ;;  %v1738_v9 = vor.u32 %v2120_v59, %v1737_v58 }
  0x44   :  { %765 = vmatpush.bf16.msrb.mxu1 %v1842_v7  ;;  %v1547_v5 = vld [vmem:[#allocation7 + $0x88] sm:$0xf0]  ;;  %v2101_v6 = vld [vmem:[#allocation7 + $0x174] sm:$0xf]  ;;  %v1667_v7 = vld [vmem:[#allocation7 + $0x178] sm:$0xf0]  ;;  %v1802_v13 = vor.u32 %v2136_v63, %v1801_v62  ;;  %v1486_v14 = vor.u32 %v2055_v0, %v1483_v2 }
  0x45   :  { %778 = vmatpush.bf16.msrb.mxu2 %v1526_v8  ;;  %v2117_v8 = vld [vmem:[#allocation7 + $0x1f4] sm:$0xf]  ;;  %v1731_v10 = vld [vmem:[#allocation7 + $0x1f8] sm:$0xf0]  ;;  %v114_v18 = vld [vmem:[#allocation2 + $0x20] sm:$0xff]  ;;  %s1418_s13 = sshll.u32 %s2463_s12, 4  ;;  %s1419_s13 = int_to_ptr.vmem [resolvable:$true] %s1418_s13 }
  0x46   :  { %791 = vmatpush.bf16.msrb.mxu3 %v1590_v12  ;;  %v2133_v11 = vld [vmem:[#allocation7 + $0x274] sm:$0xf]  ;;  %v1795_v12 = vld [vmem:[#allocation7 + $0x278] sm:$0xf0]  ;;  %v1734_v23 = vor.u32 %v2117_v8, %v1731_v10  ;;  %v2099_v25 = vld [vmem:[#allocation7 + $0x164] sm:$0xf]  ;;  %v2553_v29 = vpack.c.bf16 %v114_v18, %v114_v18 }
  0x47   :  { %753 = vmatpush.bf16.msrb.mxu0 %v1770_v20  ;;  %v2149_v15 = vld [vmem:[#allocation7 + $0x2f4] sm:$0xf]  ;;  %v1859_v17 = vld [vmem:[#allocation7 + $0x2f8] sm:$0xf0]  ;;  %v1550_v20 = vor.u32 %v2071_v4, %v1547_v5  ;;  %v1798_v24 = vor.u32 %v2133_v11, %v1795_v12  ;;  %v2115_v27 = vld [vmem:[#allocation7 + $0x1e4] sm:$0xf] }
  0x48   :  { %766 = vmatpush.bf16.msrb.mxu1 %v1834_v21  ;;  %v1670_v21 = vor.u32 %v2101_v6, %v1667_v7  ;;  %v1862_v28 = vor.u32 %v2149_v15, %v1859_v17  ;;  %v1723_v30 = vld [vmem:[#allocation7 + $0x1e8] sm:$0xf0]  ;;  %v2131_v31 = vld [vmem:[#allocation7 + $0x264] sm:$0xf]  ;;  %v2097_v39 = vld [vmem:[#allocation7 + $0x154] sm:$0xf] }
  0x49   :  { %779 = vmatpush.bf16.msrb.mxu2 %v1518_v22  ;;  %v115_v22 = vld [vmem:[#allocation2 + $0x28] sm:$0xff]  ;;  %v1726_v37 = vor.u32 %v2115_v27, %v1723_v30  ;;  %v1651_v40 = vld [vmem:[#allocation7 + $0x158] sm:$0xf0]  ;;  %v2113_v41 = vld [vmem:[#allocation7 + $0x1d4] sm:$0xf]  ;;  %s1440_s3 = sshll.u32 %s2464_s16, 4  ;;  %s1441_s3 = int_to_ptr.vmem [resolvable:$true] %s1440_s3 }
  0x4a   :  { %792 = vmatpush.bf16.msrb.mxu3 %v1582_v26  ;;  %v1659_v26 = vld [vmem:[#allocation7 + $0x168] sm:$0xf0]  ;;  %v1715_v43 = vld [vmem:[#allocation7 + $0x1d8] sm:$0xf0]  ;;  %v1654_v48 = vor.u32 %v2097_v39, %v1651_v40  ;;  %v2095_v51 = vld [vmem:[#allocation7 + $0x144] sm:$0xf] }
  0x4b   :  { %754 = vmatpush.bf16.msrb.mxu0 %v1762_v32  ;;  %v1787_v32 = vld [vmem:[#allocation7 + $0x268] sm:$0xf0]  ;;  %v1662_v36 = vor.u32 %v2099_v25, %v1659_v26  ;;  %v1843_v47 = vld [vmem:[#allocation7 + $0x2d8] sm:$0xf0]  ;;  %v1718_v49 = vor.u32 %v2113_v41, %v1715_v43  ;;  %v2111_v53 = vld [vmem:[#allocation7 + $0x1c4] sm:$0xf] }
  0x4c   :  { %767 = vmatpush.bf16.msrb.mxu1 %v1826_v33  ;;  %v2555_v33 = vpack.c.bf16 %v115_v22, %v115_v22  ;;  %v1851_v35 = vld [vmem:[#allocation7 + $0x2e8] sm:$0xf0]  ;;  %v2143_v59 = vld [vmem:[#allocation7 + $0x2c4] sm:$0xf]  ;;  %v2093_v62 = vld [vmem:[#allocation7 + $0x134] sm:$0xf] }
  0x4d   :  { %780 = vmatpush.bf16.msrb.mxu2 %v1510_v34  ;;  %v2147_v34 = vld [vmem:[#allocation7 + $0x2e4] sm:$0xf]  ;;  %v1643_v52 = vld [vmem:[#allocation7 + $0x148] sm:$0xf0]  ;;  %v1635_v63 = vld [vmem:[#allocation7 + $0x138] sm:$0xf0] }
  0x4e   :  { %793 = vmatpush.bf16.msrb.mxu3 %v1574_v38  ;;  %v1790_v38 = vor.u32 %v2131_v31, %v1787_v32  ;;  %v1854_v42 = vor.u32 %v2147_v34, %v1851_v35  ;;  %v1707_v56 = vld [vmem:[#allocation7 + $0x1c8] sm:$0xf0]  ;;  %v2109_v0 = vld [vmem:[#allocation7 + $0x1b4] sm:$0xf]  ;;  %v1699_v2 = vld [vmem:[#allocation7 + $0x1b8] sm:$0xf0]  ;;  %v1638_v8 = vor.u32 %v2093_v62, %v1635_v63 }
  0x4f   :  { %755 = vmatpush.bf16.msrb.mxu0 %v1754_v44  ;;  %v2129_v44 = vld [vmem:[#allocation7 + $0x254] sm:$0xf]  ;;  %v1771_v58 = vld [vmem:[#allocation7 + $0x248] sm:$0xf0]  ;;  %v1763_v5 = vld [vmem:[#allocation7 + $0x238] sm:$0xf0] }
  0x50   :  { %768 = vmatpush.bf16.msrb.mxu1 %v1818_v45  ;;  %v1779_v45 = vld [vmem:[#allocation7 + $0x258] sm:$0xf0]  ;;  %v2125_v4 = vld [vmem:[#allocation7 + $0x234] sm:$0xf]  ;;  %v2091_v11 = vld [vmem:[#allocation7 + $0x124] sm:$0xf] }
  0x51   :  { %781 = vmatpush.bf16.msrb.mxu2 %v1502_v46  ;;  %v2145_v46 = vld [vmem:[#allocation7 + $0x2d4] sm:$0xf]  ;;  %v1827_v7 = vld [vmem:[#allocation7 + $0x2b8] sm:$0xf0]  ;;  %v1766_v10 = vor.u32 %v2125_v4, %v1763_v5  ;;  %v1627_v12 = vld [vmem:[#allocation7 + $0x128] sm:$0xf0] }
  0x52   :  { %794 = vmatpush.bf16.msrb.mxu3 %v1566_v50  ;;  %v1782_v50 = vor.u32 %v2129_v44, %v1779_v45  ;;  %v1846_v54 = vor.u32 %v2145_v46, %v1843_v47  ;;  %v2141_v6 = vld [vmem:[#allocation7 + $0x2b4] sm:$0xf]  ;;  %v1691_v15 = vld [vmem:[#allocation7 + $0x1a8] sm:$0xf0]  ;;  %v2123_v17 = vld [vmem:[#allocation7 + $0x224] sm:$0xf]  ;;  %v1630_v22 = vor.u32 %v2091_v11, %v1627_v12 }
  0x53   :  { %756 = vmatpush.bf16.msrb.mxu0 %v1746_v57  ;;  %v2127_v57 = vld [vmem:[#allocation7 + $0x244] sm:$0xf]  ;;  %v1755_v18 = vld [vmem:[#allocation7 + $0x228] sm:$0xf0]  ;;  %v2089_v25 = vld [vmem:[#allocation7 + $0x114] sm:$0xf] }
  0x54   :  { %769 = vmatpush.bf16.msrb.mxu1 %v1810_v60  ;;  %v1835_v60 = vld [vmem:[#allocation7 + $0x2c8] sm:$0xf0]  ;;  %v1619_v26 = vld [vmem:[#allocation7 + $0x118] sm:$0xf0]  ;;  %v2105_v27 = vld [vmem:[#allocation7 + $0x194] sm:$0xf] }
  0x55   :  { %782 = vmatpush.bf16.msrb.mxu2 %v1494_v61  ;;  %v1710_v61 = vor.u32 %v2111_v53, %v1707_v56  ;;  %v1683_v30 = vld [vmem:[#allocation7 + $0x198] sm:$0xf0]  ;;  %v2121_v31 = vld [vmem:[#allocation7 + $0x214] sm:$0xf]  ;;  %v2103_v41 = vld [vmem:[#allocation7 + $0x184] sm:$0xf] }
  0x56   :  { %795 = vmatpush.bf16.msrb.mxu3 %v1558_v1  ;;  %v1838_v1 = vor.u32 %v2143_v59, %v1835_v60  ;;  %v1747_v32 = vld [vmem:[#allocation7 + $0x218] sm:$0xf0]  ;;  %v2137_v34 = vld [vmem:[#allocation7 + $0x294] sm:$0xf]  ;;  %v1686_v39 = vor.u32 %v2105_v27, %v1683_v30  ;;  %v2119_v43 = vld [vmem:[#allocation7 + $0x204] sm:$0xf] }
  0x57   :  { %757 = vmatpush.bf16.msrb.mxu0 %v1738_v9  ;;  %v1702_v9 = vor.u32 %v2109_v0, %v1699_v2  ;;  %v1811_v35 = vld [vmem:[#allocation7 + $0x298] sm:$0xf0]  ;;  %v1750_v40 = vor.u32 %v2121_v31, %v1747_v32  ;;  %v1739_v45 = vld [vmem:[#allocation7 + $0x208] sm:$0xf0]  ;;  %v2135_v46 = vld [vmem:[#allocation7 + $0x284] sm:$0xf] }
  0x58   :  { %770 = vmatpush.bf16.msrb.mxu1 %v1802_v13  ;;  %v2107_v13 = vld [vmem:[#allocation7 + $0x1a4] sm:$0xf]  ;;  %v1814_v44 = vor.u32 %v2137_v34, %v1811_v35  ;;  %v1803_v47 = vld [vmem:[#allocation7 + $0x288] sm:$0xf0]  ;;  %v2165_v53 = vld [vmem:[#allocation8 + $0x74] sm:$0xf] }
  0x59   :  { %783 = vmatpush.bf16.msrb.mxu2 %v1486_v14  ;;  %v1830_v14 = vor.u32 %v2141_v6, %v1827_v7  ;;  %v1987_v59 = vld [vmem:[#allocation8 + $0xf8] sm:$0xf0]  ;;  %v1806_v60 = vor.u32 %v2135_v46, %v1803_v47  ;;  %v1913_v62 = vld [vmem:[#allocation8 + $0x60] sm:$0xf]  ;;  %v2164_v63 = vld [vmem:[#allocation8 + $0x64] sm:$0xf0] }
  0x5a   :  { %796 = vmatpush.bf16.msrb.mxu3 %v1550_v20  ;;  %758 = vmatmul.bf16.vlgmr.msrb.gmra.mxu0 %v2553_v29  ;;  %v2139_v20 = vld [vmem:[#allocation7 + $0x2a4] sm:$0xf]  ;;  %v1977_v0 = vld [vmem:[#allocation8 + $0xe0] sm:$0xf]  ;;  %v2180_v2 = vld [vmem:[#allocation8 + $0xe4] sm:$0xf0] }
  0x5b   :  { %802 = vmatpush.bf16.msra.mxu0 %v1670_v21  ;;  %771 = vmatmul.bf16.vlgmr.msrb.gmra.mxu1 %v2555_v33  ;;  %v1819_v21 = vld [vmem:[#allocation7 + $0x2a8] sm:$0xf0]  ;;  %v2163_v4 = vld [vmem:[#allocation8 + $0x64] sm:$0xf]  ;;  %v1905_v11 = vld [vmem:[#allocation8 + $0x50] sm:$0xf] }
  0x5c   :  { %815 = vmatpush.bf16.msra.mxu1 %v1734_v23  ;;  %784 = vmatmul.bf16.vlgmr.msrb.gmra.mxu2 %v2541_v55  ;;  %v1646_v55 = vor.u32 %v2095_v51, %v1643_v52  ;;  %v1694_v23 = vor.u32 %v2107_v13, %v1691_v15  ;;  %v2182_v52 = vld [vmem:[#allocation8 + $0xf4] sm:$0xf0]  ;;  %v1915_v5 = vld [vmem:[#allocation8 + $0x68] sm:$0xf0]  ;;  %v2179_v6 = vld [vmem:[#allocation8 + $0xe4] sm:$0xf] }
  0x5d   :  { %828 = vmatpush.bf16.msra.mxu2 %v1798_v24  ;;  %797 = vmatmul.bf16.vlgmr.msrb.gmra.mxu3 %v2544_v3  ;;  %v1774_v3 = vor.u32 %v2127_v57, %v1771_v58  ;;  %v1758_v24 = vor.u32 %v2123_v17, %v1755_v18  ;;  %v1742_v57 = vor.u32 %v2119_v43, %v1739_v45  ;;  %v2181_v58 = vld [vmem:[#allocation8 + $0xf4] sm:$0xf]  ;;  %v1979_v7 = vld [vmem:[#allocation8 + $0xe8] sm:$0xf0]  ;;  %v2162_v12 = vld [vmem:[#allocation8 + $0x54] sm:$0xf0] }
  0x5e   :  { %841 = vmatpush.bf16.msra.mxu3 %v1862_v28  ;;  %v1822_v28 = vor.u32 %v2139_v20, %v1819_v21  ;;  %v1969_v13 = vld [vmem:[#allocation8 + $0xd0] sm:$0xf]  ;;  %v2178_v15 = vld [vmem:[#allocation8 + $0xd4] sm:$0xf0]  ;;  %v2161_v17 = vld [vmem:[#allocation8 + $0x54] sm:$0xf] }
  0x5f   :  { %803 = vmatpush.bf16.msra.mxu0 %v1662_v36  ;;  %v1622_v36 = vor.u32 %v2089_v25, %v1619_v26  ;;  %v1907_v18 = vld [vmem:[#allocation8 + $0x58] sm:$0xf0]  ;;  %v2177_v20 = vld [vmem:[#allocation8 + $0xd4] sm:$0xf]  ;;  %v1897_v25 = vld [vmem:[#allocation8 + $0x40] sm:$0xf] }
  0x60   :  { %816 = vmatpush.bf16.msra.mxu1 %v1726_v37  ;;  %v2087_v37 = vld [vmem:[#allocation7 + $0x104] sm:$0xf]  ;;  %v1971_v21 = vld [vmem:[#allocation8 + $0xd8] sm:$0xf0]  ;;  %v1961_v26 = vld [vmem:[#allocation8 + $0xc0] sm:$0xf] }
  0x61   :  { %829 = vmatpush.bf16.msra.mxu2 %v1790_v38  ;;  %v1611_v38 = vld [vmem:[#allocation7 + $0x108] sm:$0xf0]  ;;  %v1974_v27 = vor.u32 %v2177_v20, %v1971_v21  ;;  %v2159_v30 = vld [vmem:[#allocation8 + $0x44] sm:$0xf]  ;;  %v1889_v35 = vld [vmem:[#allocation8 + $0x30] sm:$0xf] }
  0x62   :  { %842 = vmatpush.bf16.msra.mxu3 %v1854_v42  ;;  %v1675_v42 = vld [vmem:[#allocation7 + $0x188] sm:$0xf0]  ;;  %v1614_v51 = vor.u32 %v2087_v37, %v1611_v38  ;;  %v2175_v31 = vld [vmem:[#allocation8 + $0xc4] sm:$0xf]  ;;  %v1953_v37 = vld [vmem:[#allocation8 + $0xb0] sm:$0xf] }
  0x63   :  { %804 = vmatpush.bf16.msra.mxu0 %v1654_v48  ;;  %v1921_v48 = vld [vmem:[#allocation8 + $0x70] sm:$0xf]  ;;  %v1678_v56 = vor.u32 %v2103_v41, %v1675_v42  ;;  %v1891_v41 = vld [vmem:[#allocation8 + $0x38] sm:$0xf0]  ;;  %v2173_v42 = vld [vmem:[#allocation8 + $0xb4] sm:$0xf] }
  0x64   :  { %817 = vmatpush.bf16.msra.mxu1 %v1718_v49  ;;  %v2166_v49 = vld [vmem:[#allocation8 + $0x74] sm:$0xf0]  ;;  %v1955_v43 = vld [vmem:[#allocation8 + $0xb8] sm:$0xf0]  ;;  %v1881_v47 = vld [vmem:[#allocation8 + $0x20] sm:$0xf] }
  0x65   :  { %830 = vmatpush.bf16.msra.mxu2 %v1782_v50  ;;  %v1985_v50 = vld [vmem:[#allocation8 + $0xf0] sm:$0xf]  ;;  %s1442_s18 = sshll.u32 %s2641_s10, 4  ;;  %s2465_s8 = smov [#allocation15]   ;;  %s1443_s18 = int_to_ptr.hbm [resolvable:$true] %s1442_s18 }
  0x66   :  { %843 = vmatpush.bf16.msra.mxu3 %v1846_v54  ;;  %v1923_v54 = vld [vmem:[#allocation8 + $0x78] sm:$0xf0]  ;;  %s1451_s19 = sshll.u32 %s2465_s8, 4  ;;  %s1452_s19 = int_to_ptr.vmem [resolvable:$true] %s1451_s19 }
  0x67   :  { %805 = vmatpush.bf16.msra.mxu0 %v1646_v55  ;;  %v1922_v55 = vor.u32 %v2166_v49, %v1921_v48  ;;  %v2156_v48 = vld [vmem:[#allocation8 + $0x24] sm:$0xf0]  ;;  %v1945_v49 = vld [vmem:[#allocation8 + $0xa0] sm:$0xf] }
  0x68   :  { %818 = vmatpush.bf16.msra.mxu1 %v1710_v61  ;;  %v1986_v61 = vor.u32 %v2182_v52, %v1985_v50  ;;  %v1958_v50 = vor.u32 %v2173_v42, %v1955_v43  ;;  %v2155_v52 = vld [vmem:[#allocation8 + $0x24] sm:$0xf] }
  0x69   :  { %831 = vmatpush.bf16.msra.mxu2 %v1774_v3  ;;  %v1926_v3 = vor.u32 %v2165_v53, %v1923_v54  ;;  %v1883_v53 = vld [vmem:[#allocation8 + $0x28] sm:$0xf0]  ;;  %v2171_v54 = vld [vmem:[#allocation8 + $0xa4] sm:$0xf] }
  0x6a   :  { %844 = vmatpush.bf16.msra.mxu3 %v1838_v1  ;;  %v1990_v1 = vor.u32 %v2181_v58, %v1987_v59  ;;  %v1886_v59 = vor.u32 %v2155_v52, %v1883_v53 }
  0x6b   :  { %806 = vmatpush.bf16.msra.mxu0 %v1638_v8  ;;  %v1914_v8 = vor.u32 %v2164_v63, %v1913_v62  ;;  %v2170_v62 = vld [vmem:[#allocation8 + $0x94] sm:$0xf0]  ;;  %v2153_v63 = vld [vmem:[#allocation8 + $0x14] sm:$0xf] }
  0x6c   :  { %819 = vmatpush.bf16.msra.mxu1 %v1702_v9  ;;  %v1978_v9 = vor.u32 %v2180_v2, %v1977_v0  ;;  %v1875_v0 = vld [vmem:[#allocation8 + $0x18] sm:$0xf0] }
  0x6d   :  { %832 = vmatpush.bf16.msra.mxu2 %v1766_v10  ;;  %v1918_v10 = vor.u32 %v2163_v4, %v1915_v5  ;;  %v1939_v2 = vld [vmem:[#allocation8 + $0x98] sm:$0xf0] }
  0x6e   :  { %845 = vmatpush.bf16.msra.mxu3 %v1830_v14  ;;  %v1982_v14 = vor.u32 %v2179_v6, %v1979_v7  ;;  %v1878_v6 = vor.u32 %v2153_v63, %v1875_v0  ;;  %v1865_v7 = vld [vmem:[#allocation8] sm:$0xf] }
  0x6f   :  { %807 = vmatpush.bf16.msra.mxu0 %v1630_v22  ;;  %v1906_v22 = vor.u32 %v2162_v12, %v1905_v11  ;;  %v2168_v11 = vld [vmem:[#allocation8 + $0x84] sm:$0xf0]  ;;  %v2151_v12 = vld [vmem:[#allocation8 + $0x4] sm:$0xf] }
  0x70   :  { %820 = vmatpush.bf16.msra.mxu1 %v1694_v23  ;;  %v1970_v23 = vor.u32 %v2178_v15, %v1969_v13  ;;  %v1867_v13 = vld [vmem:[#allocation8 + $0x8] sm:$0xf0] }
  0x71   :  { %833 = vmatpush.bf16.msra.mxu2 %v1758_v24  ;;  %v1910_v24 = vor.u32 %v2161_v17, %v1907_v18  ;;  %v1931_v15 = vld [vmem:[#allocation8 + $0x88] sm:$0xf0]  ;;  %v854_v18 = vld [vmem:[#allocation5] sm:$0xff]  ;;  %v1870_v21 = vor.u32 %v2151_v12, %v1867_v13 }
  0x72   :  { %846 = vmatpush.bf16.msra.mxu3 %v1822_v28  ;;  %v2176_v28 = vld [vmem:[#allocation8 + $0xc4] sm:$0xf0] }
  0x73   :  { %808 = vmatpush.bf16.msra.mxu0 %v1622_v36  ;;  %v2158_v36 = vld [vmem:[#allocation8 + $0x34] sm:$0xf0] }
  0x74   :  { %821 = vmatpush.bf16.msra.mxu1 %v1686_v39  ;;  %v2174_v39 = vld [vmem:[#allocation8 + $0xb4] sm:$0xf0] }
  0x75   :  { %834 = vmatpush.bf16.msra.mxu2 %v1750_v40  ;;  %v2157_v40 = vld [vmem:[#allocation8 + $0x34] sm:$0xf]  ;;  %v1954_v45 = vor.u32 %v2174_v39, %v1953_v37 }
  0x76   :  { %847 = vmatpush.bf16.msra.mxu3 %v1814_v44  ;;  %v1890_v44 = vor.u32 %v2158_v36, %v1889_v35  ;;  %v1894_v46 = vor.u32 %v2157_v40, %v1891_v41 }
  0x77   :  { %809 = vmatpush.bf16.msra.mxu0 %v1614_v51  ;;  %v2172_v51 = vld [vmem:[#allocation8 + $0xa4] sm:$0xf0] }
  0x78   :  { %822 = vmatpush.bf16.msra.mxu1 %v1678_v56  ;;  %v1947_v56 = vld [vmem:[#allocation8 + $0xa8] sm:$0xf0]  ;;  %v1946_v58 = vor.u32 %v2172_v51, %v1945_v49 }
  0x79   :  { %835 = vmatpush.bf16.msra.mxu2 %v1742_v57  ;;  %v1882_v57 = vor.u32 %v2156_v48, %v1881_v47 }
  0x7a   :  { %848 = vmatpush.bf16.msra.mxu3 %v1806_v60  ;;  %810 = vmatmul.bf16.vlgmr.msra.gmra.mxu0 %v2547_v16  ;;  %v1899_v16 = vld [vmem:[#allocation8 + $0x48] sm:$0xf0]  ;;  %v1873_v60 = vld [vmem:[#allocation8 + $0x10] sm:$0xf] }
  0x7b   :  { %1050 = vmatpush.bf16.msrb.mxu0 %v1922_v55  ;;  %823 = vmatmul.bf16.vlgmr.msra.gmra.mxu1 %v2549_v19  ;;  %v1962_v19 = vor.u32 %v2176_v28, %v1961_v26  ;;  %v1902_v34 = vor.u32 %v2159_v30, %v1899_v16  ;;  %v2154_v55 = vld [vmem:[#allocation8 + $0x14] sm:$0xf0] }
  0x7c   :  { %1063 = vmatpush.bf16.msrb.mxu1 %v1986_v61  ;;  %836 = vmatmul.bf16.vlgmr.msra.gmra.mxu2 %v2553_v29  ;;  %v2160_v29 = vld [vmem:[#allocation8 + $0x44] sm:$0xf0]  ;;  %v1937_v61 = vld [vmem:[#allocation8 + $0x90] sm:$0xf]  ;;  %v1874_v4 = vor.u32 %v2154_v55, %v1873_v60 }
  0x7d   :  { %1076 = vmatpush.bf16.msrb.mxu2 %v1926_v3  ;;  %849 = vmatmul.bf16.vlgmr.msra.gmra.mxu3 %v2555_v33  ;;  %v1963_v33 = vld [vmem:[#allocation8 + $0xc8] sm:$0xf0]  ;;  %v1898_v32 = vor.u32 %v2160_v29, %v1897_v25  ;;  %v1950_v3 = vor.u32 %v2171_v54, %v1947_v56  ;;  %v1938_v5 = vor.u32 %v2170_v62, %v1937_v61 }
  0x7e   :  { %1089 = vmatpush.bf16.msrb.mxu3 %v1990_v1  ;;  %v1966_v38 = vor.u32 %v2175_v31, %v1963_v33  ;;  %v2169_v1 = vld [vmem:[#allocation8 + $0x94] sm:$0xf]  ;;  %v2461_v33 = vmov 8.0  }
  0x7f   :  { %1051 = vmatpush.bf16.msrb.mxu0 %v1914_v8  ;;  %v2152_v8 = vld [vmem:[#allocation8 + $0x4] sm:$0xf0]  ;;  %2214 = vrcp.f32 %v2461_v33 }
  0x80   :  { %1064 = vmatpush.bf16.msrb.mxu1 %v1978_v9  ;;  %v1929_v9 = vld [vmem:[#allocation8 + $0x80] sm:$0xf]  ;;  %v1866_v17 = vor.u32 %v2152_v8, %v1865_v7 }
  0x81   :  { %1077 = vmatpush.bf16.msrb.mxu2 %v1918_v10  ;;  %v1942_v10 = vor.u32 %v2169_v1, %v1939_v2  ;;  %v1930_v20 = vor.u32 %v2168_v11, %v1929_v9 }
  0x82   :  { %1090 = vmatpush.bf16.msrb.mxu3 %v1982_v14  ;;  %v2167_v14 = vld [vmem:[#allocation8 + $0x84] sm:$0xf] }
  0x83   :  { %1052 = vmatpush.bf16.msrb.mxu0 %v1906_v22  ;;  %v855_v22 = vld [vmem:[#allocation5 + $0x8] sm:$0xff] }
  0x84   :  { %1065 = vmatpush.bf16.msrb.mxu1 %v1970_v23  ;;  %v1934_v23 = vor.u32 %v2167_v14, %v1931_v15  ;;  %v857_v25 = vpack.c.bf16 %v855_v22, %v855_v22 }
  0x85   :  { %1078 = vmatpush.bf16.msrb.mxu2 %v1910_v24  ;;  %v856_v24 = vpack.c.bf16 %v854_v18, %v854_v18  ;;  %v2215_v35 = vpop.eup %2214 }
  0x86   :  { %1091 = vmatpush.bf16.msrb.mxu3 %v1974_v27  ;;  %v1117_v37 = vmul.f32 8.0, %v2215_v35  ;;  %vm1121_vm0 = vweird.f32 %v2215_v35 }
  0x87   :  { %1053 = vmatpush.bf16.msrb.mxu0 %v1898_v32 }
  0x88   :  { %1066 = vmatpush.bf16.msrb.mxu1 %v1962_v19  ;;  %v1118_v41 = vsub.f32 1.0, %v1117_v37 }
  0x89   :  { %1079 = vmatpush.bf16.msrb.mxu2 %v1902_v34 }
  0x8a   :  { %1092 = vmatpush.bf16.msrb.mxu3 %v1966_v38 }
  0x8b   :  { %1054 = vmatpush.bf16.msrb.mxu0 %v1890_v44  ;;  %v1119_v44 = vmul.f32 %v2215_v35, %v1118_v41 }
  0x8c   :  { %1067 = vmatpush.bf16.msrb.mxu1 %v1954_v45 }
  0x8d   :  { %1080 = vmatpush.bf16.msrb.mxu2 %v1894_v46  ;;  %v1120_v51 = vadd.f32 %v2215_v35, %v1119_v44 }
  0x8e   :  { %1093 = vmatpush.bf16.msrb.mxu3 %v1958_v50 }
  0x8f   :  { %1055 = vmatpush.bf16.msrb.mxu0 %v1882_v57  ;;  %v2565_v54 = vsel %vm1121_vm0, %v2215_v35, %v1120_v51 }
  0x90   :  { %1068 = vmatpush.bf16.msrb.mxu1 %v1946_v58 }
  0x91   :  { %1081 = vmatpush.bf16.msrb.mxu2 %v1886_v59 }
  0x92   :  { %1094 = vmatpush.bf16.msrb.mxu3 %v1950_v3 }
  0x93   :  { %1056 = vmatpush.bf16.msrb.mxu0 %v1874_v4 }
  0x94   :  { %1069 = vmatpush.bf16.msrb.mxu1 %v1938_v5 }
  0x95   :  { %1082 = vmatpush.bf16.msrb.mxu2 %v1878_v6 }
  0x96   :  { %1095 = vmatpush.bf16.msrb.mxu3 %v1942_v10 }
  0x97   :  { %1057 = vmatpush.bf16.msrb.mxu0 %v1866_v17 }
  0x98   :  { %1070 = vmatpush.bf16.msrb.mxu1 %v1930_v20 }
  0x99   :  { %1083 = vmatpush.bf16.msrb.mxu2 %v1870_v21 }
  0x9a   :  { %1096 = vmatpush.bf16.msrb.mxu3 %v1934_v23  ;;  %1058 = vmatmul.bf16.vlgmr.msrb.gmra.mxu0 %v856_v24 }
  0x9b   :  { %1071 = vmatmul.bf16.vlgmr.msrb.gmra.mxu1 %v857_v25 }
  0x9c   :  { %1084 = vmatmul.bf16.vlgmr.msrb.gmra.mxu2 %v856_v24 }
  0x9d   :  { %1097 = vmatmul.bf16.vlgmr.msrb.gmra.mxu3 %v857_v25 }
  0xb7   :  { %v707_v29 = vpop.f32.mrf.mxu0 }
  0xb8   :  { %v720_v26 = vpop.f32.mrf.mxu1 }
  0xb9   :  { %v721_v31 = vadd.f32 %v720_v26, %v707_v29 }
  0xbf   :  { %v709_v27 = vpop.f32.mrf.mxu0  ;;  %v733_v30 = vpop.f32.mrf.mxu2 }
  0xc0   :  { %v722_v28 = vpop.f32.mrf.mxu1  ;;  %v746_v16 = vpop.f32.mrf.mxu3  ;;  %v734_v19 = vadd.f32 %v733_v30, %v721_v31  ;;  %v2572_v27 = vld [vmem:[%s2635_s4] sm:$0x3]  ;;  %s2462_s4 = smov [#allocation12]  }
  0xc1   :  { %v1166_v31 = vperm.slane %v2572_v27, 0 }
  0xc2   :  { %v747_v36 = vadd.f32 %v746_v16, %v734_v19 }
  0xc7   :  { %v735_v32 = vpop.f32.mrf.mxu2 }
  0xc8   :  { %v748_v34 = vpop.f32.mrf.mxu3 }
  0xc9   :  { %v2581_v34 = vld [vmem:[%s2636_s5] sm:$0x3]  ;;  %s1429_s5 = sshll.u32 %s2462_s4, 4  ;;  %s1430_s5 = int_to_ptr.vmem [resolvable:$true] %s1429_s5 }
  0xd7   :  { %v759_v38 = vpop.f32.mrf.mxu0 }
  0xd8   :  { %v760_v39 = vadd.f32 %v759_v38, %v747_v36  ;;  %v772_v40 = vpop.f32.mrf.mxu1 }
  0xda   :  { %v773_v42 = vadd.f32 %v772_v40, %v760_v39  ;;  %v1177_v39 = vperm.slane %v2581_v34, 0 }
  0xdc   :  { %v1104_v43 = vrot.slane %v773_v42, 4 }
  0xde   :  { %v1105_v45 = vadd.f32 %v1104_v43, %v773_v42 }
  0xdf   :  { %v785_v46 = vpop.f32.mrf.mxu2  ;;  %v761_v48 = vpop.f32.mrf.mxu0 }
  0xe0   :  { %v798_v47 = vpop.f32.mrf.mxu3  ;;  %v1106_v49 = vrot.slane %v1105_v45, 2  ;;  %v774_v50 = vpop.f32.mrf.mxu1 }
  0xe1   :  { %v799_v63 = vadd.f32 %v798_v47, %v785_v46  ;;  %v2190_v46 = vld [vmem:[#allocation10 + $0x38] sm:$0xff] }
  0xe2   :  { %v1107_v52 = vadd.f32 %v1106_v49, %v1105_v45  ;;  %1383 = vmatpush.bf16.msra.mxu0 %v2190_v46 }
  0xe4   :  { %v1108_v53 = vrot.slane %v1107_v52, 1 }
  0xe6   :  { %v1109_v56 = vadd.f32 %v1108_v53, %v1107_v52  ;;  %v2189_v52 = vld [vmem:[#allocation10 + $0x30] sm:$0xff] }
  0xe7   :  { %v787_v57 = vpop.f32.mrf.mxu2  ;;  %1384 = vmatpush.bf16.msra.mxu0 %v2189_v52 }
  0xe8   :  { %v800_v58 = vpop.f32.mrf.mxu3  ;;  %v1123_v59 = vmul.f32 %v2565_v54, %v1109_v56 }
  0xea   :  { %v1125_v60 = vsub.f32 %v773_v42, %v1123_v59 }
  0xec   :  { %v1127_v55 = vmul.f32 %v1125_v60, %v1125_v60 }
  0xee   :  { %v1129_v61 = vrot.slane %v1127_v55, 4 }
  0xf0   :  { %v1130_v3 = vadd.f32 %v1129_v61, %v1127_v55 }
  0xf2   :  { %v1131_v62 = vrot.slane %v1130_v3, 2 }
  0xf4   :  { %v1132_v0 = vadd.f32 %v1131_v62, %v1130_v3 }
  0xf6   :  { %v1133_v1 = vrot.slane %v1132_v0, 1 }
  0xf7   :  { %v811_v2 = vpop.f32.mrf.mxu0 }
  0xf8   :  { %v812_v4 = vadd.f32 %v811_v2, %v799_v63  ;;  %v824_v5 = vpop.f32.mrf.mxu1  ;;  %v1134_v6 = vadd.f32 %v1133_v1, %v1132_v0  ;;  %v2188_v63 = vld [vmem:[#allocation10 + $0x28] sm:$0xff] }
  0xf9   :  { %1385 = vmatpush.bf16.msra.mxu0 %v2188_v63 }
  0xfa   :  { %v825_v7 = vadd.f32 %v824_v5, %v812_v4  ;;  %v1141_v8 = vmul.f32 %v1134_v6, %v2565_v54  ;;  %v2197_v4 = vld [vmem:[#allocation10 + $0x70] sm:$0xff] }
  0xfc   :  { %v1143_v10 = vadd.f32 1e-05, %v1141_v8  ;;  %v2187_v8 = vld [vmem:[#allocation10 + $0x20] sm:$0xff] }
  0xfd   :  { %1386 = vmatpush.bf16.msra.mxu0 %v2187_v8 }
  0xfe   :  { %2216 = vrsqrt.f32 %v1143_v10  ;;  %vm1151_vm2 = vweird.f32 %v1143_v10 }
  0xff   :  { %v837_v9 = vpop.f32.mrf.mxu2  ;;  %v813_v14 = vpop.f32.mrf.mxu0 }
 0x100   :  { %v838_v11 = vadd.f32 %v837_v9, %v825_v7  ;;  %v850_v12 = vpop.f32.mrf.mxu3  ;;  %v826_v15 = vpop.f32.mrf.mxu1 }
 0x102   :  { %v851_v13 = vadd.f32 %v850_v12, %v838_v11 }
 0x104   :  { %v1110_v17 = vrot.slane %v851_v13, 4  ;;  %v2217_v21 = vpop.eup %2216 }
 0x105   :  { %v1146_v24 = vmul.f32 %v2217_v21, %v1143_v10  ;;  %vm1152_vm1 = vweird.f32 %v2217_v21 }
 0x106   :  { %v1111_v18 = vadd.f32 %v1110_v17, %v851_v13  ;;  %vm1153_vm3 = vmor %vm1151_vm2, %vm1152_vm1  ;;  %v2186_v17 = vld [vmem:[#allocation10 + $0x18] sm:$0xff] }
 0x107   :  { %v839_v20 = vpop.f32.mrf.mxu2  ;;  %v1147_v29 = vmul.f32 %v2217_v21, %v1146_v24  ;;  %1387 = vmatpush.bf16.msra.mxu0 %v2186_v17 }
 0x108   :  { %v1112_v22 = vrot.slane %v1111_v18, 2  ;;  %v852_v23 = vpop.f32.mrf.mxu3 }
 0x109   :  { %v1148_v28 = vmul.f32 0.5, %v1147_v29 }
 0x10a   :  { %v1113_v25 = vadd.f32 %v1112_v22, %v1111_v18 }
 0x10b   :  { %v1149_v16 = vsub.f32 1.5, %v1148_v28 }
 0x10c   :  { %v1114_v26 = vrot.slane %v1113_v25, 1 }
 0x10d   :  { %v1150_v32 = vmul.f32 %v2217_v21, %v1149_v16 }
 0x10e   :  { %v1115_v30 = vadd.f32 %v1114_v26, %v1113_v25  ;;  %v2185_v25 = vld [vmem:[#allocation10 + $0x10] sm:$0xff] }
 0x10f   :  { %v1154_v35 = vsel %vm1153_vm3, %v2217_v21, %v1150_v32  ;;  %v2195_v21 = vld [vmem:[#allocation10 + $0x60] sm:$0xff]  ;;  %1388 = vmatpush.bf16.msra.mxu0 %v2185_v25 }
 0x110   :  { %v1124_v33 = vmul.f32 %v2565_v54, %v1115_v30  ;;  %v1170_v36 = vmul.f32 %v1166_v31, %v1154_v35  ;;  %v2194_v30 = vld [vmem:[#allocation10 + $0x58] sm:$0xff]  ;;  %v2184_v35 = vld [vmem:[#allocation10 + $0x8] sm:$0xff] }
 0x112   :  { %v2576_v19 = vsub.f32 %v851_v13, %v1124_v33  ;;  %v1172_v38 = vperm.slane %v1170_v36, 0  ;;  %v2196_v13 = vld [vmem:[#allocation10 + $0x68] sm:$0xff] }
 0x113   :  { %1389 = vmatpush.bf16.msra.mxu0 %v2184_v35 }
 0x114   :  { %v1128_v37 = vmul.f32 %v2576_v19, %v2576_v19  ;;  %v1174_v43 = vmul.f32 %v1172_v38, %v1125_v60  ;;  %v2198_v60 = vld [vmem:[#allocation10 + $0x78] sm:$0xff] }
 0x115   :  { %1397 = vmatpush.bf16.msra.mxu1 %v2198_v60 }
 0x116   :  { %v1135_v40 = vrot.slane %v1128_v37, 4  ;;  %v2590_v47 = vadd.f32 %v1177_v39, %v1174_v43  ;;  %v1167_v43 = vperm.slane %v2572_v27, 1 }
 0x117   :  { %v1059_v41 = vpop.f32.mrf.mxu0 }
 0x118   :  { %v1072_v42 = vpop.f32.mrf.mxu1  ;;  %v1136_v44 = vadd.f32 %v1135_v40, %v1128_v37  ;;  %1245 = vst [vmem:[#allocation11] sm:$0xff] %v2590_v47  ;;  %v2193_v40 = vld [vmem:[#allocation10 + $0x50] sm:$0xff] }
 0x119   :  { %v1073_v45 = vadd.f32 %v1072_v42, %v1059_v41  ;;  %1398 = vmatpush.bf16.msra.mxu1 %v2197_v4 }
 0x11a   :  { %v1137_v48 = vrot.slane %v1136_v44, 2 }
 0x11b   :  { %v1183_v49 = vrot.slane %v1073_v45, 4 }
 0x11c   :  { %v1138_v50 = vadd.f32 %v1137_v48, %v1136_v44 }
 0x11d   :  { %v1184_v51 = vadd.f32 %v1183_v49, %v1073_v45  ;;  %1399 = vmatpush.bf16.msra.mxu1 %v2196_v13 }
 0x11e   :  { %v1139_v56 = vrot.slane %v1138_v50, 1 }
 0x11f   :  { %v1085_v53 = vpop.f32.mrf.mxu2  ;;  %v1185_v57 = vrot.slane %v1184_v51, 2  ;;  %v1061_v59 = vpop.f32.mrf.mxu0 }
 0x120   :  { %v1098_v58 = vpop.f32.mrf.mxu3  ;;  %v1074_v61 = vpop.f32.mrf.mxu1  ;;  %v1140_v3 = vadd.f32 %v1139_v56, %v1138_v50  ;;  %v2192_v50 = vld [vmem:[#allocation10 + $0x48] sm:$0xff]  ;;  %v1178_v59 = vperm.slane %v2581_v34, 1 }
 0x121   :  { %v1099_v55 = vadd.f32 %v1098_v58, %v1085_v53  ;;  %v1186_v62 = vadd.f32 %v1185_v57, %v1184_v51  ;;  %1400 = vmatpush.bf16.msra.mxu1 %v2195_v21 }
 0x122   :  { %v1142_v1 = vmul.f32 %v1140_v3, %v2565_v54 }
 0x123   :  { %v1189_v0 = vrot.slane %v1099_v55, 4  ;;  %v1187_v2 = vrot.slane %v1186_v62, 1 }
 0x124   :  { %v1144_v6 = vadd.f32 1e-05, %v1142_v1 }
 0x125   :  { %v1190_v5 = vadd.f32 %v1189_v0, %v1099_v55  ;;  %v1188_v7 = vadd.f32 %v1187_v2, %v1186_v62  ;;  %1401 = vmatpush.bf16.msra.mxu1 %v2194_v30 }
 0x126   :  { %2218 = vrsqrt.f32 %v1144_v6  ;;  %vm1161_vm5 = vweird.f32 %v1144_v6 }
 0x127   :  { %v1191_v9 = vrot.slane %v1190_v5, 2  ;;  %v1087_v10 = vpop.f32.mrf.mxu2  ;;  %v1195_v11 = vmul.f32 %v1188_v7, %v2565_v54 }
 0x128   :  { %v1100_v12 = vpop.f32.mrf.mxu3 }
 0x129   :  { %v1192_v14 = vadd.f32 %v1191_v9, %v1190_v5  ;;  %v2595_v15 = vsub.f32 %v1073_v45, %v1195_v11  ;;  %1402 = vmatpush.bf16.msra.mxu1 %v2193_v40  ;;  %v2183_v45 = vld [vmem:[#allocation10] sm:$0xff] }
 0x12a   :  { %1390 = vmatpush.bf16.msra.mxu0 %v2183_v45 }
 0x12b   :  { %v1193_v18 = vrot.slane %v1192_v14, 1  ;;  %v1199_v20 = vmul.f32 %v2595_v15, %v2595_v15 }
 0x12c   :  { %v2219_v23 = vpop.eup %2218 }
 0x12d   :  { %v1194_v22 = vadd.f32 %v1193_v18, %v1192_v14  ;;  %v1201_v24 = vrot.slane %v1199_v20, 4  ;;  %v1156_v29 = vmul.f32 %v2219_v23, %v1144_v6  ;;  %vm1162_vm4 = vweird.f32 %v2219_v23  ;;  %1403 = vmatpush.bf16.msra.mxu1 %v2192_v50 }
 0x12e   :  { %vm1163_vm6 = vmor %vm1161_vm5, %vm1162_vm4 }
 0x12f   :  { %v1196_v26 = vmul.f32 %v1194_v22, %v2565_v54  ;;  %v1202_v28 = vadd.f32 %v1201_v24, %v1199_v20  ;;  %v1157_v16 = vmul.f32 %v2219_v23, %v1156_v29 }
 0x131   :  { %v2600_v33 = vsub.f32 %v1099_v55, %v1196_v26  ;;  %v1203_v32 = vrot.slane %v1202_v28, 2  ;;  %v1158_v36 = vmul.f32 0.5, %v1157_v16  ;;  %v2191_v55 = vld [vmem:[#allocation10 + $0x40] sm:$0xff] }
 0x132   :  { %1404 = vmatpush.bf16.msra.mxu1 %v2191_v55 }
 0x133   :  { %v1200_v37 = vmul.f32 %v2600_v33, %v2600_v33  ;;  %v1204_v38 = vadd.f32 %v1203_v32, %v1202_v28  ;;  %v1159_v41 = vsub.f32 1.5, %v1158_v36 }
 0x135   :  { %v1207_v42 = vrot.slane %v1200_v37, 4  ;;  %v1205_v44 = vrot.slane %v1204_v38, 1  ;;  %v1160_v46 = vmul.f32 %v2219_v23, %v1159_v41 }
 0x137   :  { %v1208_v48 = vadd.f32 %v1207_v42, %v1200_v37  ;;  %v1206_v49 = vadd.f32 %v1205_v44, %v1204_v38  ;;  %v1164_v51 = vsel %vm1163_vm6, %v2219_v23, %v1160_v46 }
 0x138   :  { %v1171_v53 = vmul.f32 %v1167_v43, %v1164_v51 }
 0x139   :  { %v1209_v52 = vrot.slane %v1208_v48, 2  ;;  %v1213_v56 = vmul.f32 %v1206_v49, %v2565_v54 }
 0x13a   :  { %v1173_v58 = vperm.slane %v1171_v53, 0 }
 0x13b   :  { %v1210_v57 = vadd.f32 %v1209_v52, %v1208_v48  ;;  %v1215_v60 = vadd.f32 1e-05, %v1213_v56 }
 0x13c   :  { %v1175_v3 = vmul.f32 %v1173_v58, %v2576_v19 }
 0x13d   :  { %v1211_v61 = vrot.slane %v1210_v57, 1  ;;  %2220 = vrsqrt.f32 %v1215_v60  ;;  %vm1223_vm8 = vweird.f32 %v1215_v60 }
 0x13e   :  { %v1182_v63 = vadd.f32 %v1178_v59, %v1175_v3 }
 0x13f   :  { %v1212_v62 = vadd.f32 %v1211_v61, %v1210_v57 }
 0x140   :  { %1246 = vst [vmem:[#allocation11 + $0x8] sm:$0xff] %v1182_v63 }
 0x141   :  { %v1214_v0 = vmul.f32 %v1212_v62, %v2565_v54  ;;  %1423 = dma.vmem_to_hbm [thread:$0]  %s1419_s13, 256, %s1421_s30, [#allocation4]  }
 0x143   :  { %v1216_v1 = vadd.f32 1e-05, %v1214_v0  ;;  %v2221_v2 = vpop.eup %2220 }
 0x144   :  { %v1218_v4 = vmul.f32 %v2221_v2, %v1215_v60  ;;  %vm1224_vm7 = vweird.f32 %v2221_v2 }
 0x145   :  { %2222 = vrsqrt.f32 %v1216_v1  ;;  %vm1225_vm9 = vmor %vm1223_vm8, %vm1224_vm7  ;;  %vm1233_vm11 = vweird.f32 %v1216_v1 }
 0x146   :  { %v1219_v5 = vmul.f32 %v2221_v2, %v1218_v4 }
 0x148   :  { %v1220_v6 = vmul.f32 0.5, %v1219_v5 }
 0x14a   :  { %v1221_v8 = vsub.f32 1.5, %v1220_v6 }
 0x14b   :  { %v2223_v7 = vpop.eup %2222 }
 0x14c   :  { %v1228_v9 = vmul.f32 %v2223_v7, %v1216_v1  ;;  %v1222_v10 = vmul.f32 %v2221_v2, %v1221_v8  ;;  %vm1234_vm10 = vweird.f32 %v2223_v7 }
 0x14d   :  { %vm1235_vm12 = vmor %vm1233_vm11, %vm1234_vm10 }
 0x14e   :  { %v1229_v19 = vmul.f32 %v2223_v7, %v1228_v9  ;;  %v1226_v11 = vsel %vm1225_vm9, %v2221_v2, %v1222_v10 }
 0x14f   :  { %v1237_v12 = vmul.f32 %v1226_v11, %v1166_v31 }
 0x150   :  { %v1230_v54 = vmul.f32 0.5, %v1229_v19 }
 0x151   :  { %v1239_v13 = vperm.slane %v1237_v12, 0 }
 0x152   :  { %v1231_v14 = vsub.f32 1.5, %v1230_v54 }
 0x153   :  { %v1241_v17 = vmul.f32 %v1239_v13, %v2595_v15 }
 0x154   :  { %v1232_v18 = vmul.f32 %v2223_v7, %v1231_v14 }
 0x155   :  { %v1243_v20 = vadd.f32 %v1241_v17, %v1177_v39  ;;  %v2213_v39 = vld [vmem:[%s2638_s7] ss:$0 sm:$0xff]  ;;  %s1453_s7 = sshll.u32 %s2642_s11, 4  ;;  %s1454_s7 = int_to_ptr.hbm [resolvable:$true] %s1453_s7 }
 0x156   :  { %v1236_v21 = vsel %vm1235_vm12, %v2223_v7, %v1232_v18 }
 0x157   :  { %v1238_v22 = vmul.f32 %v1236_v21, %v1167_v43  ;;  %1247 = vst [vmem:[#allocation12] sm:$0xff] %v1243_v20  ;;  %v1249_v23 = vpack.c.bf16 %v1243_v20, %v2590_v47 }
 0x159   :  { %v1240_v24 = vperm.slane %v1238_v22, 0  ;;  %1391 = vmatmul.bf16.vlgmr.msra.gmra.mxu0 %v1249_v23 }
 0x15b   :  { %v1242_v27 = vmul.f32 %v1240_v24, %v2600_v33 }
 0x15d   :  { %v1244_v31 = vadd.f32 %v1242_v27, %v1178_v59 }
 0x15f   :  { %1248 = vst [vmem:[#allocation12 + $0x8] sm:$0xff] %v1244_v31  ;;  %v1250_v25 = vpack.c.bf16 %v1244_v31, %v1182_v63 }
 0x160   :  { %1434 = dma.vmem_to_hbm [thread:$0]  %s1430_s5, 256, %s1432_s28, [#allocation13]  }
 0x161   :  { %1405 = vmatmul.bf16.vlgmr.msra.gmra.mxu1 %v1250_v25 }
 0x1d6   :  { %v1392_v34 = vpop.f32.mrf.mxu0 }
 0x1d7   :  { %v1393_v47 = vadd.f32 %v2213_v39, %v1392_v34 }
 0x1de   :  { %v1406_v15 = vpop.f32.mrf.mxu1  ;;  %v1394_v26 = vpop.f32.mrf.mxu0 }
 0x1df   :  { %v1407_v29 = vadd.f32 %v1406_v15, %v1393_v47  ;;  %v1395_v28 = vadd.f32 %v2213_v39, %v1394_v26 }
 0x1e1   :  { %1411 = vst [vmem:[#allocation14] sm:$0xff] %v1407_v29 }
 0x1e2   :  { %1445 = dma.vmem_to_hbm [thread:$0]  %s1441_s3, 128, %s1443_s18, [#allocation13]  }
 0x1e6   :  { %v1408_v30 = vpop.f32.mrf.mxu1 }
 0x1e7   :  { %v1409_v16 = vadd.f32 %v1408_v30, %v1395_v28 }
 0x1e9   :  { %1412 = vst [vmem:[#allocation15] sm:$0xff] %v1409_v16 }
 0x1ea   :  { %1456 = dma.vmem_to_hbm [thread:$0]  %s1452_s19, 128, %s1454_s7, [#allocation16]  }
 0x1eb   :  { %2446 = dma.done.wait [#allocation4], 256  }
 0x1ec   :  { %2447 = vsyncadd [#allocation4], 4294967040 }
 0x1ed   :  { %2448 = dma.done.wait [#allocation13], 384  }
 0x1ee   :  { %2449 = vsyncadd [#allocation13], 4294966912 }
 0x1ef   :  { %2450 = dma.done.wait [#allocation16], 128  }
 0x1f0   :  { %2451 = vsyncadd [#allocation16], 4294967168 }
 0x1f1   :  { %1473 = vsyncpa [#allocation3], 1 }
 0x1f2   :  { %1474 = vsyncpa [#allocation6], 1 }
 0x1f3   :  { %1475 = vsyncpa [#allocation9], 1 }
 0x1f4   :  { %1476 = vsyncpa [#allocation4], 1 }
 0x1f5   :  { %1477 = vsyncpa [#allocation13], 1 }
 0x1f6   :  { %1478 = vsyncpa [#allocation16], 1 }

</bundles_post_ra>
